<compile_context>
chip_gen: v6e
topology: v6e:2x2x1
jax: 0.10.0
libtpu: 0.0.40
codegen_flags: <defaults>
</compile_context>

<pallas_src>
import numpy as np

import jax
import jax.numpy as jnp
from jax import lax
from jax.experimental import pallas as pl
from jax.experimental.pallas import tpu as pltpu


# ---------------------------------------------------------------------------
# Static layer configuration (matches the PyTorch module exactly).
#   (cin, cout, (kh, kw), (sh, sw), (ph, pw), apply_sigmoid)
# ---------------------------------------------------------------------------
_LAYERS = (
    (3, 7, (1, 1), (1, 1), (0, 0), True),    # conv1 -> sigmoid
    (7, 3, (3, 3), (2, 3), (1, 1), False),   # conv2 (no activation)
    (3, 10, (2, 2), (1, 1), (0, 0), True),   # conv3 -> sigmoid
    (10, 6, (5, 5), (2, 2), (1, 1), True),   # conv4 -> sigmoid
)
_LAYER_NAMES = ("conv1", "conv2", "conv3", "conv4")


def _out_dim(size, k, s, p):
    return (size + 2 * p - k) // s + 1


def _layer_geoms(h0, w0):
    geoms = []
    h, w = h0, w0
    for (cin, cout, (kh, kw), (sh, sw), (ph, pw), act) in _LAYERS:
        oh = _out_dim(h, kh, sh, ph)
        ow = _out_dim(w, kw, sw, pw)
        geoms.append(dict(cin=cin, cout=cout, kh=kh, kw=kw, sh=sh, sw=sw,
                          ph=ph, pw=pw, h=h, w=w, oh=oh, ow=ow, act=act))
        h, w = oh, ow
    return geoms


def _layer_mode(g, bpc):
    """How the H (row) dimension of this layer is handled in the kernel."""
    if g["kh"] == 1 and g["sh"] == 1 and g["ph"] == 0:
        return "full"      # row window == whole slab (works for any batch stacking)
    if bpc == 1 and g["sh"] == 1 and g["ph"] == 0:
        return "slice"     # static contiguous row slice per tap
    return "rowsel"        # 0/1 row-selection matmul (stride/pad and/or stacked batch)


# ---------------------------------------------------------------------------
# One-time host-side weight lowering.
# ---------------------------------------------------------------------------
def _row_select(kh, sh, ph, h, oh):
    """R[i, r, src] = 1  iff  src == r*sh + i - ph  and 0 <= src < h."""
    m = np.zeros((kh, oh, h), np.float32)
    for i in range(kh):
        for r in range(oh):
            src = r * sh + i - ph
            if 0 <= src < h:
                m[i, r, src] = 1.0
    return m


def _col_mask(kw, sw, pw, w, ow):
    """M[j, q, src] = 1  iff  src == q*sw + j - pw  and 0 <= src < w."""
    m = np.zeros((kw, ow, w), np.float32)
    for j in range(kw):
        for q in range(ow):
            src = q * sw + j - pw
            if 0 <= src < w:
                m[j, q, src] = 1.0
    return m


def prepare_params(params, input_hw, batch_per_step=1):
    """Lower conv weights into lane-packed matmul matrices (done once, eagerly).

    Per layer:
      Wpacked[i, c*W + m, o*OW + q] = weight[o, c, i, j]  where m = q*sw + j - pw
      bias_wide[0, o*OW + q]        = bias[o]
      RowSel (only where needed), block-diagonal over batch_per_step copies.
    The 0/1 mask contractions are exact in f32.
    """
    geoms = _layer_geoms(*input_hw)
    bpc = batch_per_step
    prep = {}
    for name, g in zip(_LAYER_NAMES, geoms):
        wgt, bias = params[name]                       # (cout,cin,kh,kw), (cout,)
        wgt = jnp.asarray(wgt, jnp.float32)
        bias = jnp.asarray(bias, jnp.float32)
        cmask = jnp.asarray(_col_mask(g["kw"], g["sw"], g["pw"], g["w"], g["ow"]))
        wp = jnp.einsum("ocij,jqm->icmoq", wgt, cmask)
        wp = wp.reshape(g["kh"], g["cin"] * g["w"], g["cout"] * g["ow"])
        entry = {
            "w": wp,
            "bias": jnp.repeat(bias, g["ow"]).reshape(1, g["cout"] * g["ow"]),
        }
        if _layer_mode(g, bpc) == "rowsel":
            base = _row_select(g["kh"], g["sh"], g["ph"], g["h"], g["oh"])
            if bpc > 1:
                eye = np.eye(bpc, dtype=np.float32)
                base = np.stack([np.kron(eye, base[i]) for i in range(g["kh"])])
            entry["rowsel"] = jnp.asarray(base)
        prep[name] = entry
    return prep


def default_batch_per_step(n):
    """v7x (2 TensorCores): one batch element per grid step so the 'parallel'
    grid axis shards batch across cores.  Single-TC v5e/v6e: fold the whole
    batch into a single grid step (stacked along the sublane / matmul-M axis)."""
    try:
        kind = jax.devices()[0].device_kind.lower()
    except Exception:
        kind = ""
    return 1 if "v7" in kind else n


# ---------------------------------------------------------------------------
# Fused forward: a single pallas_call for the whole network.
# ---------------------------------------------------------------------------
def fused_forward(x, prep, batch_per_step):
    n, cin0, h0, w0 = x.shape
    bpc = batch_per_step
    assert n % bpc == 0
    n_steps = n // bpc

    geoms = _layer_geoms(h0, w0)
    assert cin0 == geoms[0]["cin"]
    modes = tuple(_layer_mode(g, bpc) for g in geoms)
    gl = geoms[-1]

    rowsels = [prep[nm]["rowsel"] for nm, m in zip(_LAYER_NAMES, modes) if m == "rowsel"]
    ws = [prep[nm]["w"] for nm in _LAYER_NAMES]
    bs = [prep[nm]["bias"] for nm in _LAYER_NAMES]
    n_rs = len(rowsels)

    # Pack: channels along lanes, the per-step batch group along sublanes.
    # (Layout plumbing only; tiny vs. kernel launch.)
    xp = jnp.transpose(x, (0, 2, 1, 3)).reshape(n_steps, bpc * h0, cin0 * w0)

    rows_out = bpc * gl["oh"]
    cols_out = gl["cout"] * gl["ow"]
    out_shape = jax.ShapeDtypeStruct((n_steps, rows_out, cols_out), x.dtype)

    def kernel(*refs):
        x_ref = refs[0]
        rs_refs = list(refs[1:1 + n_rs])
        w_refs = refs[1 + n_rs:5 + n_rs]
        b_refs = refs[5 + n_rs:9 + n_rs]
        o_ref = refs[9 + n_rs]

        def sigmoid(v):
            # Exact (to f32 rounding), EUP tanh instead of a VPU divide.
            return 0.5 * jnp.tanh(0.5 * v) + 0.5

        rs_iter = iter(rs_refs)
        a = x_ref[0]                                   # (bpc*h0, cin0*w0)
        for g, mode, w_ref, b_ref in zip(geoms, modes, w_refs, b_refs):
            rows = bpc * g["oh"]
            rs_ref = next(rs_iter) if mode == "rowsel" else None
            acc = jnp.zeros((rows, g["cout"] * g["ow"]), jnp.float32)
            for i in range(g["kh"]):
                if mode == "full":
                    y = a
                elif mode == "slice":
                    y = a[i:i + rows, :]
                else:
                    y = jnp.dot(rs_ref[i], a, preferred_element_type=jnp.float32)
                acc = acc + jnp.dot(y, w_ref[i], preferred_element_type=jnp.float32)
            acc = acc + b_ref[...]
            a = sigmoid(acc) if g["act"] else acc
        o_ref[0] = a.astype(o_ref.dtype)               # one lane-dense store

    def whole(arr):
        return pl.BlockSpec(arr.shape, lambda s, _nd=arr.ndim: (0,) * _nd)

    out_packed = pl.pallas_call(
        kernel,
        out_shape=out_shape,
        grid=(n_steps,),
        in_specs=[pl.BlockSpec((1, bpc * h0, cin0 * w0), lambda s: (s, 0, 0))]
                 + [whole(r) for r in rowsels]
                 + [whole(w) for w in ws]
                 + [whole(b) for b in bs],
        out_specs=pl.BlockSpec((1, rows_out, cols_out), lambda s: (s, 0, 0)),
        compiler_params=pltpu.CompilerParams(dimension_semantics=("parallel",)),
    )(xp, *rowsels, *ws, *bs)

    # Lane-dense packed output -> NCHW (wrapper-side reshape, free vs launch).
    out = out_packed.reshape(n, gl["oh"], gl["cout"], gl["ow"])
    return jnp.transpose(out, (0, 2, 1, 3))


model_forward = jax.jit(fused_forward, static_argnums=(2,))


# ---------------------------------------------------------------------------
# Parameter initialization (deterministic, PyTorch-Conv2d-style uniform init).
# ---------------------------------------------------------------------------
def init_conv_params(key, cout, cin, kh, kw):
    fan_in = cin * kh * kw
    bound = 1.0 / np.sqrt(float(fan_in))
    kw_key, kb_key = jax.random.split(key)
    w = jax.random.uniform(kw_key, (cout, cin, kh, kw), jnp.float32,
                           minval=-bound, maxval=bound)
    b = jax.random.uniform(kb_key, (cout,), jnp.float32,
                           minval=-bound, maxval=bound)
    return w, b


def init_params(key):
    keys = jax.random.split(key, 4)
    params = {}
    for k, name, (cin, cout, (kh, kw), _, _, _) in zip(keys, _LAYER_NAMES, _LAYERS):
        params[name] = init_conv_params(k, cout, cin, kh, kw)
    return params


# ---------------------------------------------------------------------------
# Pure-JAX reference (lax conv) to sanity-check the Pallas result.
# ---------------------------------------------------------------------------
def _ref_conv(x, w, b, stride, padding):
    y = lax.conv_general_dilated(
        x, w, window_strides=stride,
        padding=[(padding[0], padding[0]), (padding[1], padding[1])],
        dimension_numbers=("NCHW", "OIHW", "NCHW"))
    return y + b.reshape(1, -1, 1, 1)


def reference_forward(x, params):
    w1, b1 = params["conv1"]
    v2 = jax.nn.sigmoid(_ref_conv(x, w1, b1, (1, 1), (0, 0)))
    w2, b2 = params["conv2"]
    v3 = _ref_conv(v2, w2, b2, (2, 3), (1, 1))
    w3, b3 = params["conv3"]
    v5 = jax.nn.sigmoid(_ref_conv(v3, w3, b3, (1, 1), (0, 0)))
    w4, b4 = params["conv4"]
    return jax.nn.sigmoid(_ref_conv(v5, w4, b4, (2, 2), (1, 1)))


if __name__ == "__main__":
    key = jax.random.PRNGKey(0)
    pkey, xkey = jax.random.split(key)

    params = init_params(pkey)
    # Small shape consistent with the module (batch=2, C=3, 32x32 spatial).
    x1 = jax.random.uniform(xkey, (2, 3, 32, 32), jnp.float32)
    n = x1.shape[0]
    input_hw = x1.shape[2:]

    ref = jax.block_until_ready(reference_forward(x1, params))
    assert ref.shape == (2, 6, 7, 4), ref.shape

    # Verify BOTH batch layouts (per-batch grid step and batch folded into M),
    # so whichever the device-default picks is known-good.
    for bpc in sorted({1, n}):
        prep = prepare_params(params, input_hw, batch_per_step=bpc)
        out = jax.block_until_ready(model_forward(x1, prep, bpc))
        assert out.shape == ref.shape, (bpc, out.shape)
        max_err = float(jnp.max(jnp.abs(out - ref)))
        assert jnp.allclose(out, ref, rtol=1e-4, atol=1e-4), (bpc, max_err)

    # Device-default configuration (what a deployment would use).
    bpc = default_batch_per_step(n)
    prep = prepare_params(params, input_hw, batch_per_step=bpc)
    out = jax.block_until_ready(model_forward(x1, prep, bpc))
    assert jnp.allclose(out, ref, rtol=1e-4, atol=1e-4)

    print("KERNEL_OK")
</pallas_src>

<mosaic_0001>
module attributes {stable_mosaic.version = 11 : i64} {
  func.func @kernel(%arg0: i32, %arg1: memref<1x32x96xf32, #tpu.memory_space<vmem>>, %arg2: memref<3x16x32xf32, #tpu.memory_space<vmem>>, %arg3: memref<5x7x15xf32, #tpu.memory_space<vmem>>, %arg4: memref<1x96x224xf32, #tpu.memory_space<vmem>>, %arg5: memref<3x224x33xf32, #tpu.memory_space<vmem>>, %arg6: memref<2x33x100xf32, #tpu.memory_space<vmem>>, %arg7: memref<5x100x24xf32, #tpu.memory_space<vmem>>, %arg8: memref<1x224xf32, #tpu.memory_space<vmem>>, %arg9: memref<1x33xf32, #tpu.memory_space<vmem>>, %arg10: memref<1x100xf32, #tpu.memory_space<vmem>>, %arg11: memref<1x24xf32, #tpu.memory_space<vmem>>, %arg12: memref<1x7x24xf32, #tpu.memory_space<vmem>>) attributes {dimension_semantics = [#tpu.dimension_semantics<parallel>], iteration_bounds = array<i64: 2>, scalar_prefetch = 0 : i64, scratch_operands = 0 : i64, tpu.core_type = #tpu.core_type<tc>, window_params = [{transform_indices = @transform_0, window_bounds = array<i64: 1, 32, 96>}, {pipeline_mode = #tpu.pipeline_mode<synchronous>, transform_indices = @transform_1, window_bounds = array<i64: 3, 16, 32>}, {pipeline_mode = #tpu.pipeline_mode<synchronous>, transform_indices = @transform_2, window_bounds = array<i64: 5, 7, 15>}, {pipeline_mode = #tpu.pipeline_mode<synchronous>, transform_indices = @transform_3, window_bounds = array<i64: 1, 96, 224>}, {pipeline_mode = #tpu.pipeline_mode<synchronous>, transform_indices = @transform_4, window_bounds = array<i64: 3, 224, 33>}, {pipeline_mode = #tpu.pipeline_mode<synchronous>, transform_indices = @transform_5, window_bounds = array<i64: 2, 33, 100>}, {pipeline_mode = #tpu.pipeline_mode<synchronous>, transform_indices = @transform_6, window_bounds = array<i64: 5, 100, 24>}, {pipeline_mode = #tpu.pipeline_mode<synchronous>, transform_indices = @transform_7, window_bounds = array<i64: 1, 224>}, {pipeline_mode = #tpu.pipeline_mode<synchronous>, transform_indices = @transform_8, window_bounds = array<i64: 1, 33>}, {pipeline_mode = #tpu.pipeline_mode<synchronous>, transform_indices = @transform_9, window_bounds = array<i64: 1, 100>}, {pipeline_mode = #tpu.pipeline_mode<synchronous>, transform_indices = @transform_10, window_bounds = array<i64: 1, 24>}, {transform_indices = @transform_11, window_bounds = array<i64: 1, 7, 24>}]} {
    %c0 = arith.constant 0 : index
    %c0_0 = arith.constant 0 : index
    %c0_1 = arith.constant 0 : index
    %0 = vector.load %arg1[%c0, %c0_0, %c0_1] : memref<1x32x96xf32, #tpu.memory_space<vmem>>, vector<1x32x96xf32>
    %1 = vector.shape_cast %0 : vector<1x32x96xf32> to vector<32x96xf32>
    %cst = arith.constant 0.000000e+00 : f32
    %2 = vector.broadcast %cst : f32 to vector<32x224xf32>
    %c0_2 = arith.constant 0 : index
    %c0_3 = arith.constant 0 : index
    %c0_4 = arith.constant 0 : index
    %3 = vector.load %arg4[%c0_2, %c0_3, %c0_4] : memref<1x96x224xf32, #tpu.memory_space<vmem>>, vector<1x96x224xf32>
    %4 = vector.shape_cast %3 : vector<1x96x224xf32> to vector<96x224xf32>
    %cst_5 = arith.constant dense<0.000000e+00> : vector<32x224xf32>
    %5 = tpu.matmul %1, %4, %cst_5 {dimension_numbers = #tpu.dot_dimension_numbers<[1], [0], [0], [1], [0, 0, 1, 1], [], []>} : vector<32x96xf32>, vector<96x224xf32>, vector<32x224xf32> -> vector<32x224xf32>
    %6 = arith.addf %2, %5 : vector<32x224xf32>
    %c0_6 = arith.constant 0 : index
    %c0_7 = arith.constant 0 : index
    %7 = vector.load %arg8[%c0_6, %c0_7] : memref<1x224xf32, #tpu.memory_space<vmem>>, vector<1x224xf32>
    %8 = vector.broadcast %7 : vector<1x224xf32> to vector<32x224xf32>
    %9 = arith.addf %6, %8 : vector<32x224xf32>
    %cst_8 = arith.constant 5.000000e-01 : f32
    %10 = vector.broadcast %cst_8 : f32 to vector<32x224xf32>
    %11 = arith.mulf %10, %9 : vector<32x224xf32>
    %12 = math.tanh %11 : vector<32x224xf32>
    %cst_9 = arith.constant 5.000000e-01 : f32
    %13 = vector.broadcast %cst_9 : f32 to vector<32x224xf32>
    %14 = arith.mulf %13, %12 : vector<32x224xf32>
    %cst_10 = arith.constant 5.000000e-01 : f32
    %15 = vector.broadcast %cst_10 : f32 to vector<32x224xf32>
    %16 = arith.addf %14, %15 : vector<32x224xf32>
    %cst_11 = arith.constant 0.000000e+00 : f32
    %17 = vector.broadcast %cst_11 : f32 to vector<16x33xf32>
    %c0_12 = arith.constant 0 : index
    %c0_13 = arith.constant 0 : index
    %c0_14 = arith.constant 0 : index
    %18 = vector.load %arg2[%c0_12, %c0_13, %c0_14] : memref<3x16x32xf32, #tpu.memory_space<vmem>>, vector<1x16x32xf32>
    %19 = vector.shape_cast %18 : vector<1x16x32xf32> to vector<16x32xf32>
    %cst_15 = arith.constant dense<0.000000e+00> : vector<16x224xf32>
    %20 = tpu.matmul %19, %16, %cst_15 {dimension_numbers = #tpu.dot_dimension_numbers<[1], [0], [0], [1], [0, 0, 1, 1], [], []>} : vector<16x32xf32>, vector<32x224xf32>, vector<16x224xf32> -> vector<16x224xf32>
    %c0_16 = arith.constant 0 : index
    %c0_17 = arith.constant 0 : index
    %c0_18 = arith.constant 0 : index
    %21 = vector.load %arg5[%c0_16, %c0_17, %c0_18] : memref<3x224x33xf32, #tpu.memory_space<vmem>>, vector<1x224x33xf32>
    %22 = vector.shape_cast %21 : vector<1x224x33xf32> to vector<224x33xf32>
    %cst_19 = arith.constant dense<0.000000e+00> : vector<16x33xf32>
    %23 = tpu.matmul %20, %22, %cst_19 {dimension_numbers = #tpu.dot_dimension_numbers<[1], [0], [0], [1], [0, 0, 1, 1], [], []>} : vector<16x224xf32>, vector<224x33xf32>, vector<16x33xf32> -> vector<16x33xf32>
    %24 = arith.addf %17, %23 : vector<16x33xf32>
    %c1 = arith.constant 1 : index
    %c0_20 = arith.constant 0 : index
    %c0_21 = arith.constant 0 : index
    %25 = vector.load %arg2[%c1, %c0_20, %c0_21] : memref<3x16x32xf32, #tpu.memory_space<vmem>>, vector<1x16x32xf32>
    %26 = vector.shape_cast %25 : vector<1x16x32xf32> to vector<16x32xf32>
    %cst_22 = arith.constant dense<0.000000e+00> : vector<16x224xf32>
    %27 = tpu.matmul %26, %16, %cst_22 {dimension_numbers = #tpu.dot_dimension_numbers<[1], [0], [0], [1], [0, 0, 1, 1], [], []>} : vector<16x32xf32>, vector<32x224xf32>, vector<16x224xf32> -> vector<16x224xf32>
    %c1_23 = arith.constant 1 : index
    %c0_24 = arith.constant 0 : index
    %c0_25 = arith.constant 0 : index
    %28 = vector.load %arg5[%c1_23, %c0_24, %c0_25] : memref<3x224x33xf32, #tpu.memory_space<vmem>>, vector<1x224x33xf32>
    %29 = vector.shape_cast %28 : vector<1x224x33xf32> to vector<224x33xf32>
    %cst_26 = arith.constant dense<0.000000e+00> : vector<16x33xf32>
    %30 = tpu.matmul %27, %29, %cst_26 {dimension_numbers = #tpu.dot_dimension_numbers<[1], [0], [0], [1], [0, 0, 1, 1], [], []>} : vector<16x224xf32>, vector<224x33xf32>, vector<16x33xf32> -> vector<16x33xf32>
    %31 = arith.addf %24, %30 : vector<16x33xf32>
    %c2 = arith.constant 2 : index
    %c0_27 = arith.constant 0 : index
    %c0_28 = arith.constant 0 : index
    %32 = vector.load %arg2[%c2, %c0_27, %c0_28] : memref<3x16x32xf32, #tpu.memory_space<vmem>>, vector<1x16x32xf32>
    %33 = vector.shape_cast %32 : vector<1x16x32xf32> to vector<16x32xf32>
    %cst_29 = arith.constant dense<0.000000e+00> : vector<16x224xf32>
    %34 = tpu.matmul %33, %16, %cst_29 {dimension_numbers = #tpu.dot_dimension_numbers<[1], [0], [0], [1], [0, 0, 1, 1], [], []>} : vector<16x32xf32>, vector<32x224xf32>, vector<16x224xf32> -> vector<16x224xf32>
    %c2_30 = arith.constant 2 : index
    %c0_31 = arith.constant 0 : index
    %c0_32 = arith.constant 0 : index
    %35 = vector.load %arg5[%c2_30, %c0_31, %c0_32] : memref<3x224x33xf32, #tpu.memory_space<vmem>>, vector<1x224x33xf32>
    %36 = vector.shape_cast %35 : vector<1x224x33xf32> to vector<224x33xf32>
    %cst_33 = arith.constant dense<0.000000e+00> : vector<16x33xf32>
    %37 = tpu.matmul %34, %36, %cst_33 {dimension_numbers = #tpu.dot_dimension_numbers<[1], [0], [0], [1], [0, 0, 1, 1], [], []>} : vector<16x224xf32>, vector<224x33xf32>, vector<16x33xf32> -> vector<16x33xf32>
    %38 = arith.addf %31, %37 : vector<16x33xf32>
    %c0_34 = arith.constant 0 : index
    %c0_35 = arith.constant 0 : index
    %39 = vector.load %arg9[%c0_34, %c0_35] : memref<1x33xf32, #tpu.memory_space<vmem>>, vector<1x33xf32>
    %40 = vector.broadcast %39 : vector<1x33xf32> to vector<16x33xf32>
    %41 = arith.addf %38, %40 : vector<16x33xf32>
    %cst_36 = arith.constant 0.000000e+00 : f32
    %42 = vector.broadcast %cst_36 : f32 to vector<15x100xf32>
    %43 = vector.extract_strided_slice %41 {offsets = [0, 0], sizes = [15, 33], strides = [1, 1]} : vector<16x33xf32> to vector<15x33xf32>
    %c0_37 = arith.constant 0 : index
    %c0_38 = arith.constant 0 : index
    %c0_39 = arith.constant 0 : index
    %44 = vector.load %arg6[%c0_37, %c0_38, %c0_39] : memref<2x33x100xf32, #tpu.memory_space<vmem>>, vector<1x33x100xf32>
    %45 = vector.shape_cast %44 : vector<1x33x100xf32> to vector<33x100xf32>
    %cst_40 = arith.constant dense<0.000000e+00> : vector<15x100xf32>
    %46 = tpu.matmul %43, %45, %cst_40 {dimension_numbers = #tpu.dot_dimension_numbers<[1], [0], [0], [1], [0, 0, 1, 1], [], []>} : vector<15x33xf32>, vector<33x100xf32>, vector<15x100xf32> -> vector<15x100xf32>
    %47 = arith.addf %42, %46 : vector<15x100xf32>
    %48 = vector.extract_strided_slice %41 {offsets = [1, 0], sizes = [15, 33], strides = [1, 1]} : vector<16x33xf32> to vector<15x33xf32>
    %c1_41 = arith.constant 1 : index
    %c0_42 = arith.constant 0 : index
    %c0_43 = arith.constant 0 : index
    %49 = vector.load %arg6[%c1_41, %c0_42, %c0_43] : memref<2x33x100xf32, #tpu.memory_space<vmem>>, vector<1x33x100xf32>
    %50 = vector.shape_cast %49 : vector<1x33x100xf32> to vector<33x100xf32>
    %cst_44 = arith.constant dense<0.000000e+00> : vector<15x100xf32>
    %51 = tpu.matmul %48, %50, %cst_44 {dimension_numbers = #tpu.dot_dimension_numbers<[1], [0], [0], [1], [0, 0, 1, 1], [], []>} : vector<15x33xf32>, vector<33x100xf32>, vector<15x100xf32> -> vector<15x100xf32>
    %52 = arith.addf %47, %51 : vector<15x100xf32>
    %c0_45 = arith.constant 0 : index
    %c0_46 = arith.constant 0 : index
    %53 = vector.load %arg10[%c0_45, %c0_46] : memref<1x100xf32, #tpu.memory_space<vmem>>, vector<1x100xf32>
    %54 = vector.broadcast %53 : vector<1x100xf32> to vector<15x100xf32>
    %55 = arith.addf %52, %54 : vector<15x100xf32>
    %cst_47 = arith.constant 5.000000e-01 : f32
    %56 = vector.broadcast %cst_47 : f32 to vector<15x100xf32>
    %57 = arith.mulf %56, %55 : vector<15x100xf32>
    %58 = math.tanh %57 : vector<15x100xf32>
    %cst_48 = arith.constant 5.000000e-01 : f32
    %59 = vector.broadcast %cst_48 : f32 to vector<15x100xf32>
    %60 = arith.mulf %59, %58 : vector<15x100xf32>
    %cst_49 = arith.constant 5.000000e-01 : f32
    %61 = vector.broadcast %cst_49 : f32 to vector<15x100xf32>
    %62 = arith.addf %60, %61 : vector<15x100xf32>
    %cst_50 = arith.constant 0.000000e+00 : f32
    %63 = vector.broadcast %cst_50 : f32 to vector<7x24xf32>
    %c0_51 = arith.constant 0 : index
    %c0_52 = arith.constant 0 : index
    %c0_53 = arith.constant 0 : index
    %64 = vector.load %arg3[%c0_51, %c0_52, %c0_53] : memref<5x7x15xf32, #tpu.memory_space<vmem>>, vector<1x7x15xf32>
    %65 = vector.shape_cast %64 : vector<1x7x15xf32> to vector<7x15xf32>
    %cst_54 = arith.constant dense<0.000000e+00> : vector<7x100xf32>
    %66 = tpu.matmul %65, %62, %cst_54 {dimension_numbers = #tpu.dot_dimension_numbers<[1], [0], [0], [1], [0, 0, 1, 1], [], []>} : vector<7x15xf32>, vector<15x100xf32>, vector<7x100xf32> -> vector<7x100xf32>
    %c0_55 = arith.constant 0 : index
    %c0_56 = arith.constant 0 : index
    %c0_57 = arith.constant 0 : index
    %67 = vector.load %arg7[%c0_55, %c0_56, %c0_57] : memref<5x100x24xf32, #tpu.memory_space<vmem>>, vector<1x100x24xf32>
    %68 = vector.shape_cast %67 : vector<1x100x24xf32> to vector<100x24xf32>
    %cst_58 = arith.constant dense<0.000000e+00> : vector<7x24xf32>
    %69 = tpu.matmul %66, %68, %cst_58 {dimension_numbers = #tpu.dot_dimension_numbers<[1], [0], [0], [1], [0, 0, 1, 1], [], []>} : vector<7x100xf32>, vector<100x24xf32>, vector<7x24xf32> -> vector<7x24xf32>
    %70 = arith.addf %63, %69 : vector<7x24xf32>
    %c1_59 = arith.constant 1 : index
    %c0_60 = arith.constant 0 : index
    %c0_61 = arith.constant 0 : index
    %71 = vector.load %arg3[%c1_59, %c0_60, %c0_61] : memref<5x7x15xf32, #tpu.memory_space<vmem>>, vector<1x7x15xf32>
    %72 = vector.shape_cast %71 : vector<1x7x15xf32> to vector<7x15xf32>
    %cst_62 = arith.constant dense<0.000000e+00> : vector<7x100xf32>
    %73 = tpu.matmul %72, %62, %cst_62 {dimension_numbers = #tpu.dot_dimension_numbers<[1], [0], [0], [1], [0, 0, 1, 1], [], []>} : vector<7x15xf32>, vector<15x100xf32>, vector<7x100xf32> -> vector<7x100xf32>
    %c1_63 = arith.constant 1 : index
    %c0_64 = arith.constant 0 : index
    %c0_65 = arith.constant 0 : index
    %74 = vector.load %arg7[%c1_63, %c0_64, %c0_65] : memref<5x100x24xf32, #tpu.memory_space<vmem>>, vector<1x100x24xf32>
    %75 = vector.shape_cast %74 : vector<1x100x24xf32> to vector<100x24xf32>
    %cst_66 = arith.constant dense<0.000000e+00> : vector<7x24xf32>
    %76 = tpu.matmul %73, %75, %cst_66 {dimension_numbers = #tpu.dot_dimension_numbers<[1], [0], [0], [1], [0, 0, 1, 1], [], []>} : vector<7x100xf32>, vector<100x24xf32>, vector<7x24xf32> -> vector<7x24xf32>
    %77 = arith.addf %70, %76 : vector<7x24xf32>
    %c2_67 = arith.constant 2 : index
    %c0_68 = arith.constant 0 : index
    %c0_69 = arith.constant 0 : index
    %78 = vector.load %arg3[%c2_67, %c0_68, %c0_69] : memref<5x7x15xf32, #tpu.memory_space<vmem>>, vector<1x7x15xf32>
    %79 = vector.shape_cast %78 : vector<1x7x15xf32> to vector<7x15xf32>
    %cst_70 = arith.constant dense<0.000000e+00> : vector<7x100xf32>
    %80 = tpu.matmul %79, %62, %cst_70 {dimension_numbers = #tpu.dot_dimension_numbers<[1], [0], [0], [1], [0, 0, 1, 1], [], []>} : vector<7x15xf32>, vector<15x100xf32>, vector<7x100xf32> -> vector<7x100xf32>
    %c2_71 = arith.constant 2 : index
    %c0_72 = arith.constant 0 : index
    %c0_73 = arith.constant 0 : index
    %81 = vector.load %arg7[%c2_71, %c0_72, %c0_73] : memref<5x100x24xf32, #tpu.memory_space<vmem>>, vector<1x100x24xf32>
    %82 = vector.shape_cast %81 : vector<1x100x24xf32> to vector<100x24xf32>
    %cst_74 = arith.constant dense<0.000000e+00> : vector<7x24xf32>
    %83 = tpu.matmul %80, %82, %cst_74 {dimension_numbers = #tpu.dot_dimension_numbers<[1], [0], [0], [1], [0, 0, 1, 1], [], []>} : vector<7x100xf32>, vector<100x24xf32>, vector<7x24xf32> -> vector<7x24xf32>
    %84 = arith.addf %77, %83 : vector<7x24xf32>
    %c3 = arith.constant 3 : index
    %c0_75 = arith.constant 0 : index
    %c0_76 = arith.constant 0 : index
    %85 = vector.load %arg3[%c3, %c0_75, %c0_76] : memref<5x7x15xf32, #tpu.memory_space<vmem>>, vector<1x7x15xf32>
    %86 = vector.shape_cast %85 : vector<1x7x15xf32> to vector<7x15xf32>
    %cst_77 = arith.constant dense<0.000000e+00> : vector<7x100xf32>
    %87 = tpu.matmul %86, %62, %cst_77 {dimension_numbers = #tpu.dot_dimension_numbers<[1], [0], [0], [1], [0, 0, 1, 1], [], []>} : vector<7x15xf32>, vector<15x100xf32>, vector<7x100xf32> -> vector<7x100xf32>
    %c3_78 = arith.constant 3 : index
    %c0_79 = arith.constant 0 : index
    %c0_80 = arith.constant 0 : index
    %88 = vector.load %arg7[%c3_78, %c0_79, %c0_80] : memref<5x100x24xf32, #tpu.memory_space<vmem>>, vector<1x100x24xf32>
    %89 = vector.shape_cast %88 : vector<1x100x24xf32> to vector<100x24xf32>
    %cst_81 = arith.constant dense<0.000000e+00> : vector<7x24xf32>
    %90 = tpu.matmul %87, %89, %cst_81 {dimension_numbers = #tpu.dot_dimension_numbers<[1], [0], [0], [1], [0, 0, 1, 1], [], []>} : vector<7x100xf32>, vector<100x24xf32>, vector<7x24xf32> -> vector<7x24xf32>
    %91 = arith.addf %84, %90 : vector<7x24xf32>
    %c4 = arith.constant 4 : index
    %c0_82 = arith.constant 0 : index
    %c0_83 = arith.constant 0 : index
    %92 = vector.load %arg3[%c4, %c0_82, %c0_83] : memref<5x7x15xf32, #tpu.memory_space<vmem>>, vector<1x7x15xf32>
    %93 = vector.shape_cast %92 : vector<1x7x15xf32> to vector<7x15xf32>
    %cst_84 = arith.constant dense<0.000000e+00> : vector<7x100xf32>
    %94 = tpu.matmul %93, %62, %cst_84 {dimension_numbers = #tpu.dot_dimension_numbers<[1], [0], [0], [1], [0, 0, 1, 1], [], []>} : vector<7x15xf32>, vector<15x100xf32>, vector<7x100xf32> -> vector<7x100xf32>
    %c4_85 = arith.constant 4 : index
    %c0_86 = arith.constant 0 : index
    %c0_87 = arith.constant 0 : index
    %95 = vector.load %arg7[%c4_85, %c0_86, %c0_87] : memref<5x100x24xf32, #tpu.memory_space<vmem>>, vector<1x100x24xf32>
    %96 = vector.shape_cast %95 : vector<1x100x24xf32> to vector<100x24xf32>
    %cst_88 = arith.constant dense<0.000000e+00> : vector<7x24xf32>
    %97 = tpu.matmul %94, %96, %cst_88 {dimension_numbers = #tpu.dot_dimension_numbers<[1], [0], [0], [1], [0, 0, 1, 1], [], []>} : vector<7x100xf32>, vector<100x24xf32>, vector<7x24xf32> -> vector<7x24xf32>
    %98 = arith.addf %91, %97 : vector<7x24xf32>
    %c0_89 = arith.constant 0 : index
    %c0_90 = arith.constant 0 : index
    %99 = vector.load %arg11[%c0_89, %c0_90] : memref<1x24xf32, #tpu.memory_space<vmem>>, vector<1x24xf32>
    %100 = vector.broadcast %99 : vector<1x24xf32> to vector<7x24xf32>
    %101 = arith.addf %98, %100 : vector<7x24xf32>
    %cst_91 = arith.constant 5.000000e-01 : f32
    %102 = vector.broadcast %cst_91 : f32 to vector<7x24xf32>
    %103 = arith.mulf %102, %101 : vector<7x24xf32>
    %104 = math.tanh %103 : vector<7x24xf32>
    %cst_92 = arith.constant 5.000000e-01 : f32
    %105 = vector.broadcast %cst_92 : f32 to vector<7x24xf32>
    %106 = arith.mulf %105, %104 : vector<7x24xf32>
    %cst_93 = arith.constant 5.000000e-01 : f32
    %107 = vector.broadcast %cst_93 : f32 to vector<7x24xf32>
    %108 = arith.addf %106, %107 : vector<7x24xf32>
    %c0_94 = arith.constant 0 : index
    %c0_95 = arith.constant 0 : index
    %c0_96 = arith.constant 0 : index
    %109 = vector.load %arg12[%c0_94, %c0_95, %c0_96] : memref<1x7x24xf32, #tpu.memory_space<vmem>>, vector<1x7x24xf32>
    %110 = vector.shape_cast %109 : vector<1x7x24xf32> to vector<7x24xf32>
    %111 = vector.shape_cast %108 : vector<7x24xf32> to vector<1x7x24xf32>
    tpu.vector_store %arg12[%c0_94, %c0_95, %c0_96], %111 {strides = array<i32>} : memref<1x7x24xf32, #tpu.memory_space<vmem>>, vector<1x7x24xf32>,
    return
  }
  func.func @transform_0(%arg0: i32) -> (i32, i32, i32) {
    %c0_i32 = arith.constant 0 : i32
    %c0_i32_0 = arith.constant 0 : i32
    %c0_i32_1 = arith.constant 0 : i32
    return %arg0, %c0_i32, %c0_i32_0 : i32, i32, i32
  }
  func.func @transform_1(%arg0: i32) -> (i32, i32, i32) {
    %c0_i32 = arith.constant 0 : i32
    %c0_i32_0 = arith.constant 0 : i32
    %c0_i32_1 = arith.constant 0 : i32
    %c0_i32_2 = arith.constant 0 : i32
    return %c0_i32, %c0_i32_0, %c0_i32_1 : i32, i32, i32
  }
  func.func @transform_2(%arg0: i32) -> (i32, i32, i32) {
    %c0_i32 = arith.constant 0 : i32
    %c0_i32_0 = arith.constant 0 : i32
    %c0_i32_1 = arith.constant 0 : i32
    %c0_i32_2 = arith.constant 0 : i32
    return %c0_i32, %c0_i32_0, %c0_i32_1 : i32, i32, i32
  }
  func.func @transform_3(%arg0: i32) -> (i32, i32, i32) {
    %c0_i32 = arith.constant 0 : i32
    %c0_i32_0 = arith.constant 0 : i32
    %c0_i32_1 = arith.constant 0 : i32
    %c0_i32_2 = arith.constant 0 : i32
    return %c0_i32, %c0_i32_0, %c0_i32_1 : i32, i32, i32
  }
  func.func @transform_4(%arg0: i32) -> (i32, i32, i32) {
    %c0_i32 = arith.constant 0 : i32
    %c0_i32_0 = arith.constant 0 : i32
    %c0_i32_1 = arith.constant 0 : i32
    %c0_i32_2 = arith.constant 0 : i32
    return %c0_i32, %c0_i32_0, %c0_i32_1 : i32, i32, i32
  }
  func.func @transform_5(%arg0: i32) -> (i32, i32, i32) {
    %c0_i32 = arith.constant 0 : i32
    %c0_i32_0 = arith.constant 0 : i32
    %c0_i32_1 = arith.constant 0 : i32
    %c0_i32_2 = arith.constant 0 : i32
    return %c0_i32, %c0_i32_0, %c0_i32_1 : i32, i32, i32
  }
  func.func @transform_6(%arg0: i32) -> (i32, i32, i32) {
    %c0_i32 = arith.constant 0 : i32
    %c0_i32_0 = arith.constant 0 : i32
    %c0_i32_1 = arith.constant 0 : i32
    %c0_i32_2 = arith.constant 0 : i32
    return %c0_i32, %c0_i32_0, %c0_i32_1 : i32, i32, i32
  }
  func.func @transform_7(%arg0: i32) -> (i32, i32) {
    %c0_i32 = arith.constant 0 : i32
    %c0_i32_0 = arith.constant 0 : i32
    %c0_i32_1 = arith.constant 0 : i32
    return %c0_i32, %c0_i32_0 : i32, i32
  }
  func.func @transform_8(%arg0: i32) -> (i32, i32) {
    %c0_i32 = arith.constant 0 : i32
    %c0_i32_0 = arith.constant 0 : i32
    %c0_i32_1 = arith.constant 0 : i32
    return %c0_i32, %c0_i32_0 : i32, i32
  }
  func.func @transform_9(%arg0: i32) -> (i32, i32) {
    %c0_i32 = arith.constant 0 : i32
    %c0_i32_0 = arith.constant 0 : i32
    %c0_i32_1 = arith.constant 0 : i32
    return %c0_i32, %c0_i32_0 : i32, i32
  }
  func.func @transform_10(%arg0: i32) -> (i32, i32) {
    %c0_i32 = arith.constant 0 : i32
    %c0_i32_0 = arith.constant 0 : i32
    %c0_i32_1 = arith.constant 0 : i32
    return %c0_i32, %c0_i32_0 : i32, i32
  }
  func.func @transform_11(%arg0: i32) -> (i32, i32, i32) {
    %c0_i32 = arith.constant 0 : i32
    %c0_i32_0 = arith.constant 0 : i32
    %c0_i32_1 = arith.constant 0 : i32
    return %arg0, %c0_i32, %c0_i32_0 : i32, i32, i32
  }
}

</mosaic_0001>

<bundles_post_ra>
// kernel: fused_forward.1
= control target key start
LH: loop header
LB: loop body
LE: loop exit
PB: predicated region body
PF: predicated region fallthrough
CT: control target
= control target key end

     0   :  { %s2840_s17 = smov 0   ;;  %s3747_s0 = inlined_call_operand.vmem [shape: f32[2,32,96], index: 0, kind: input, shape index: {}]   ;;  %s3748_s1 = inlined_call_operand.vmem [shape: f32[3,16,32], index: 1, kind: input, shape index: {}]   ;;  %s3749_s2 = inlined_call_operand.vmem [shape: f32[5,7,15], index: 2, kind: input, shape index: {}]   ;;  %s3750_s3 = inlined_call_operand.vmem [shape: f32[1,96,224], index: 3, kind: input, shape index: {}]   ;;  %s3751_s4 = inlined_call_operand.vmem [shape: f32[3,224,33], index: 4, kind: input, shape index: {}]   ;;  %s3752_s5 = inlined_call_operand.vmem [shape: f32[2,33,100], index: 5, kind: input, shape index: {}]   ;;  %s3753_s6 = inlined_call_operand.vmem [shape: f32[5,100,24], index: 6, kind: input, shape index: {}]   ;;  %s3754_s7 = inlined_call_operand.vmem [shape: f32[1,224], index: 7, kind: input, shape index: {}]   ;;  %s3755_s8 = inlined_call_operand.vmem [shape: f32[1,33], index: 8, kind: input, shape index: {}]   ;;  %s3756_s9 = inlined_call_operand.vmem [shape: f32[1,100], index: 9, kind: input, shape index: {}]   ;;  %s3757_s10 = inlined_call_operand.vmem [shape: f32[1,24], index: 10, kind: input, shape index: {}]   ;;  %s3758_s11 = inlined_call_operand.vmem [shape: f32[2,7,24], index: 11, kind: output, shape index: {}]  }
   0x1 LB: > { %s2256_s18 = sadd.s32 4294967295, %s2776_s17   ;;  %p2260_p0 = scmp.ge.s32.totalorder %s2776_s17, 1  ;;  %s2776_s17 = sphi %s2840_s17, %s21_s17  }
   0x2   : > { %p337_p1 = scmp.lt.s32.totalorder %s2776_s17, 3 }
   0x4   : > { %p338_p2 = pnand %p2260_p0, %p337_p1 }
   0x5   : > { %p376_p3 = scmp.lt.s32.totalorder (!%p338_p2), %s2256_s18, 1 }
   0x6   : > { %341 = sbr.rel (%p338_p2) target bundleno = 1951 (0x79f), region = 64 }
   0xb   : > { %v412_v0 = vld [vmem:[%s3750_s3 + $0xb8] sm:$0xff]  ;;  %v411_v1 = vld [vmem:[%s3750_s3 + $0xb0] sm:$0xff]  ;;  %v410_v2 = vld [vmem:[%s3750_s3 + $0xa8] sm:$0xff]  ;;  %v2778_v4 = vmov 0.0   ;;  %s3760_s18 = smov (!%p376_p3, %s2256_s18), 1  ;;  %vm425_vm0 = vcmask 785408   ;;  %v415_v37 = vlaneseq }
   0xc   : > { %446 = vmatprep.subr.mxu0 %v412_v0  ;;  %v409_v3 = vld [vmem:[%s3750_s3 + $0xa0] sm:$0xff]  ;;  %502 = vmatprep.mubr.f32.mxu0 %v2778_v4  ;;  %v408_v5 = vld [vmem:[%s3750_s3 + $0x98] sm:$0xff]  ;;  %v407_v6 = vld [vmem:[%s3750_s3 + $0x90] sm:$0xff]  ;;  %s2432_s23 = sshll.u32 %s3760_s18, 5  ;;  %vm561_vm1 = vcmask 261120   ;;  %vm1179_vm2 = vcmask 1040384  }
   0xd   : > { %447 = vmatpush1.msra.mxu0 %v411_v1  ;;  %632 = vmatprep.mubr.f32.mxu1 %v2778_v4  ;;  %v406_v7 = vld [vmem:[%s3750_s3 + $0x88] sm:$0xff]  ;;  %v405_v8 = vld [vmem:[%s3750_s3 + $0x80] sm:$0xff]  ;;  %v404_v9 = vld [vmem:[%s3750_s3 + $0x78] sm:$0xff]  ;;  %s380_s13 = scalar_lea.vmem %s3747_s0, %s2432_s23  ;;  %v416_v40 = vshrl.u32 %v415_v37, 7  ;;  %vm1170_vm3 = vcmask 1046528   ;;  %vm1174_vm4 = vcmask 269312  }
   0xe   : > { %448 = vmatprep.subr.mxu0 %v410_v2  ;;  %v403_v10 = vld [vmem:[%s3750_s3 + $0x70] sm:$0xff]  ;;  %v402_v11 = vld [vmem:[%s3750_s3 + $0x68] sm:$0xff]  ;;  %v401_v12 = vld [vmem:[%s3750_s3 + $0x60] sm:$0xff]  ;;  %vm2779_vm5 = vmmov 0   ;;  %vm1358_vm6 = vcmask 121856   ;;  %vm1541_vm7 = vcmask 1043456  }
   0xf   : > { %449 = vmatpush1.msra.mxu0 %v409_v3  ;;  %v400_v13 = vld [vmem:[%s3750_s3 + $0x58] sm:$0xff]  ;;  %v399_v14 = vld [vmem:[%s3750_s3 + $0x50] sm:$0xff]  ;;  %v398_v15 = vld [vmem:[%s3750_s3 + $0x48] sm:$0xff]  ;;  %v421_v43 = vsub.s32 1, %v416_v40  ;;  %v417_v48 = vsub.s32 0, %v416_v40  ;;  %vm1537_vm8 = vcmask 818176  }
  0x10   : > { %450 = vmatprep.subr.mxu0 %v408_v5  ;;  %v397_v16 = vld [vmem:[%s3750_s3 + $0x40] sm:$0xff]  ;;  %v396_v17 = vld [vmem:[%s3750_s3 + $0x38] sm:$0xff]  ;;  %v395_v18 = vld [vmem:[%s3750_s3 + $0x30] sm:$0xff]  ;;  %s2263_s28 = sshll.u32 %s3760_s18, 3  ;;  %vm2201_vm9 = vcmask 194560  }
  0x11   : > { %451 = vmatpush1.msra.mxu0 %v407_v6  ;;  %v394_v19 = vld [vmem:[%s3750_s3 + $0x28] sm:$0xff]  ;;  %v393_v20 = vld [vmem:[%s3750_s3 + $0x20] sm:$0xff]  ;;  %v392_v21 = vld [vmem:[%s3750_s3 + $0x18] sm:$0xff]  ;;  %s384_s12 = scalar_lea.vmem %s3758_s11, %s2263_s28 }
  0x12   : > { %452 = vmatprep.subr.mxu0 %v406_v7  ;;  %v391_v22 = vld [vmem:[%s3750_s3 + $0x10] sm:$0xff]  ;;  %v390_v23 = vld [vmem:[%s3750_s3 + $0x8] sm:$0xff]  ;;  %v389_v24 = vld [vmem:[%s3750_s3] sm:$0xff] }
  0x13   : > { %453 = vmatpush1.msra.mxu0 %v405_v8  ;;  %v385_v25 = vld [vmem:[%s380_s13] sm:$0xff]  ;;  %v386_v26 = vld [vmem:[%s380_s13 + $0x8] sm:$0xff]  ;;  %v387_v27 = vld [vmem:[%s380_s13 + $0x10] sm:$0xff] }
  0x14   : > { %454 = vmatprep.subr.mxu0 %v404_v9  ;;  %v388_v28 = vld [vmem:[%s380_s13 + $0x18] sm:$0xff]  ;;  %v659_v30 = vld [vmem:[%s3751_s4 + $0x70] sm:$0xff]  ;;  %v658_v31 = vld [vmem:[%s3751_s4 + $0x68] sm:$0xff] }
  0x15   : > { %455 = vmatpush1.msra.mxu0 %v403_v10  ;;  %v660_v29 = vld [vmem:[%s3751_s4 + $0x78] sm:$0xff]  ;;  %v657_v32 = vld [vmem:[%s3751_s4 + $0x60] sm:$0xff]  ;;  %v655_v34 = vld [vmem:[%s3751_s4 + $0x50] sm:$0xff] }
  0x16   : > { %456 = vmatprep.subr.mxu0 %v402_v11  ;;  %v656_v33 = vld [vmem:[%s3751_s4 + $0x58] sm:$0xff]  ;;  %v654_v35 = vld [vmem:[%s3751_s4 + $0x48] sm:$0xff]  ;;  %v653_v36 = vld [vmem:[%s3751_s4 + $0x40] sm:$0xff] }
  0x17   : > { %457 = vmatpush1.msra.mxu0 %v401_v12  ;;  %v652_v38 = vld [vmem:[%s3751_s4 + $0x38] sm:$0xff]  ;;  %v651_v39 = vld [vmem:[%s3751_s4 + $0x30] sm:$0xff]  ;;  %v650_v41 = vld [vmem:[%s3751_s4 + $0x28] sm:$0xff] }
  0x18   : > { %458 = vmatprep.subr.mxu0 %v400_v13  ;;  %v649_v44 = vld [vmem:[%s3751_s4 + $0x20] sm:$0xff]  ;;  %v648_v46 = vld [vmem:[%s3751_s4 + $0x18] sm:$0xff]  ;;  %v647_v51 = vld [vmem:[%s3751_s4 + $0x10] sm:$0xff] }
  0x19   : > { %459 = vmatpush1.msra.mxu0 %v399_v14  ;;  %v413_v47 = vld [vmem:[%s3754_s7] sm:$0x3]  ;;  %v646_v54 = vld [vmem:[%s3751_s4 + $0x8] sm:$0xff]  ;;  %v672_v62 = vld [vmem:[%s3751_s4 + $0xd8] sm:$0xff] }
  0x1a   : > { %460 = vmatprep.subr.mxu0 %v398_v15  ;;  %v422_v50 = vrot.slane %v413_v47, %v421_v43  ;;  %v418_v55 = vrot.slane %v413_v47, %v417_v48  ;;  %v645_v57 = vld [vmem:[%s3751_s4] sm:$0xff]  ;;  %v671_v5 = vld [vmem:[%s3751_s4 + $0xd0] sm:$0xff]  ;;  %v670_v11 = vld [vmem:[%s3751_s4 + $0xc8] sm:$0xff] }
  0x1b   : > { %461 = vmatpush1.msra.mxu0 %v397_v16  ;;  %v669_v15 = vld [vmem:[%s3751_s4 + $0xc0] sm:$0xff]  ;;  %v560_v48 = vld [vmem:[%s3748_s1 + $0x8] sm:$0xff] }
  0x1c   : > { %462 = vmatprep.subr.mxu0 %v396_v17  ;;  %v668_v17 = vld [vmem:[%s3751_s4 + $0xb8] sm:$0xff]  ;;  %v559_v47 = vld [vmem:[%s3748_s1] sm:$0xff] }
  0x1d   : > { %463 = vmatpush1.msra.mxu0 %v395_v18  ;;  %v667_v18 = vld [vmem:[%s3751_s4 + $0xb0] sm:$0xff] }
  0x1e   : > { %464 = vmatprep.subr.mxu0 %v394_v19  ;;  %v666_v19 = vld [vmem:[%s3751_s4 + $0xa8] sm:$0xff] }
  0x1f   : > { %465 = vmatpush1.msra.mxu0 %v393_v20  ;;  %v665_v20 = vld [vmem:[%s3751_s4 + $0xa0] sm:$0xff] }
  0x20   : > { %466 = vmatprep.subr.mxu0 %v392_v21  ;;  %v664_v21 = vld [vmem:[%s3751_s4 + $0x98] sm:$0xff] }
  0x21   : > { %467 = vmatpush1.msra.mxu0 %v391_v22 }
  0x22   : > { %468 = vmatprep.subr.mxu0 %v390_v23 }
  0x23   : > { %469 = vmatpush1.msra.mxu0 %v389_v24  ;;  %v663_v24 = vld [vmem:[%s3751_s4 + $0x90] sm:$0xff] }
  0x24   : > { %2264 = vmatmul.mubr.msk.f32.vlgmr.msra.gmra.mxu0 %vm425_vm0, %v385_v25  ;;  %875 = vmatprep.subr.mxu0 %v2778_v4 }
  0x25   : > { %508 = vmatprep.mubr.f32.mxu0 %v2778_v4  ;;  %876 = vmatpush1.msra.mxu0 %v660_v29 }
  0x26   : > { %877 = vmatprep.subr.mxu0 %v2778_v4 }
  0x27   : > { %878 = vmatpush1.msra.mxu0 %v659_v30 }
  0x28   : > { %2265 = vmatmul.mubr.msk.f32.gmra.mxu0 %vm425_vm0, %v386_v26  ;;  %879 = vmatprep.subr.mxu0 %v2778_v4 }
  0x29   : > { %514 = vmatprep.mubr.f32.mxu0 %v2778_v4  ;;  %880 = vmatpush1.msra.mxu0 %v658_v31 }
  0x2a   : > { %881 = vmatprep.subr.mxu0 %v2778_v4 }
  0x2b   : > { %882 = vmatpush1.msra.mxu0 %v657_v32 }
  0x2c   : > { %2266 = vmatmul.mubr.msk.f32.gmra.mxu0 %vm425_vm0, %v387_v27  ;;  %883 = vmatprep.subr.mxu0 %v2778_v4 }
  0x2d   : > { %520 = vmatprep.mubr.f32.mxu0 %v2778_v4  ;;  %884 = vmatpush1.msra.mxu0 %v656_v33 }
  0x2e   : > { %885 = vmatprep.subr.mxu0 %v2778_v4 }
  0x2f   : > { %886 = vmatpush1.msra.mxu0 %v655_v34 }
  0x30   : > { %2267 = vmatmul.mubr.msk.f32.gmra.mxu0 %vm425_vm0, %v388_v28  ;;  %887 = vmatprep.subr.mxu0 %v2778_v4 }
  0x31   : > { %888 = vmatpush1.msra.mxu0 %v654_v35 }
  0x32   : > { %889 = vmatprep.subr.mxu0 %v2778_v4 }
  0x33   : > { %890 = vmatpush1.msra.mxu0 %v653_v36 }
  0x34   : > { %891 = vmatprep.subr.mxu0 %v2778_v4 }
  0x35   : > { %892 = vmatpush1.msra.mxu0 %v652_v38 }
  0x36   : > { %893 = vmatprep.subr.mxu0 %v2778_v4 }
  0x37   : > { %894 = vmatpush1.msra.mxu0 %v651_v39 }
  0x38   : > { %895 = vmatprep.subr.mxu0 %v2778_v4 }
  0x39   : > { %896 = vmatpush1.msra.mxu0 %v650_v41 }
  0x3a   : > { %897 = vmatprep.subr.mxu0 %v2778_v4 }
  0x3b   : > { %898 = vmatpush1.msra.mxu0 %v649_v44 }
  0x3c   : > { %899 = vmatprep.subr.mxu0 %v2778_v4 }
  0x3d   : > { %900 = vmatpush1.msra.mxu0 %v648_v46 }
  0x3e   : > { %901 = vmatprep.subr.mxu0 %v2778_v4 }
  0x3f   : > { %902 = vmatpush1.msra.mxu0 %v647_v51  ;;  %v2288_v51 = vld [vmem:[%s3751_s4 + $0x150] sm:$0xff] }
  0x40   : > { %903 = vmatprep.subr.mxu0 %v2778_v4 }
  0x41   : > { %904 = vmatpush1.msra.mxu0 %v646_v54  ;;  %v2286_v54 = vld [vmem:[%s3751_s4 + $0x140] sm:$0xff] }
  0x42   : > { %905 = vmatprep.subr.mxu0 %v2778_v4 }
  0x43   : > { %906 = vmatpush1.msra.mxu0 %v645_v57  ;;  %v2283_v57 = vld [vmem:[%s3751_s4 + $0x128] sm:$0xff] }
  0x44   : > { %915 = vmatprep.subr.mxu0 %v2778_v4 }
  0x45   : > { %916 = vmatpush2.msra.mxu0 %v672_v62  ;;  %v2278_v62 = vld [vmem:[%s3751_s4 + $0x100] sm:$0xff] }
  0x46   : > { %917 = vmatprep.subr.mxu0 %v2778_v4 }
  0x47   : > { %918 = vmatpush2.msra.mxu0 %v671_v5  ;;  %v2300_v5 = vld [vmem:[%s3751_s4 + $0x1b0] sm:$0xff] }
  0x48   : > { %919 = vmatprep.subr.mxu0 %v2778_v4 }
  0x49   : > { %920 = vmatpush2.msra.mxu0 %v670_v11  ;;  %v2294_v11 = vld [vmem:[%s3751_s4 + $0x180] sm:$0xff] }
  0x4a   : > { %921 = vmatprep.subr.mxu0 %v2778_v4 }
  0x4b   : > { %922 = vmatpush2.msra.mxu0 %v669_v15  ;;  %v2290_v15 = vld [vmem:[%s3751_s4 + $0x160] sm:$0xff] }
  0x4c   : > { %923 = vmatprep.subr.mxu0 %v2778_v4 }
  0x4d   : > { %924 = vmatpush2.msra.mxu0 %v668_v17  ;;  %v661_v17 = vld [vmem:[%s3751_s4 + $0x80] sm:$0xff] }
  0x4e   : > { %925 = vmatprep.subr.mxu0 %v2778_v4 }
  0x4f   : > { %926 = vmatpush2.msra.mxu0 %v667_v18 }
  0x50   : > { %927 = vmatprep.subr.mxu0 %v2778_v4 }
  0x51   : > { %928 = vmatpush2.msra.mxu0 %v666_v19 }
  0x52   : > { %929 = vmatprep.subr.mxu0 %v2778_v4 }
  0x53   : > { %930 = vmatpush2.msra.mxu0 %v665_v20  ;;  %v2325_v20 = vld [vmem:[%s3751_s4 + $0x238] sm:$0xff] }
  0x54   : > { %931 = vmatprep.subr.mxu0 %v2778_v4 }
  0x55   : > { %932 = vmatpush2.msra.mxu0 %v664_v21 }
  0x56   : > { %933 = vmatprep.subr.mxu0 %v2778_v4 }
  0x57   : > { %934 = vmatpush2.msra.mxu0 %v663_v24  ;;  %v2323_v24 = vld [vmem:[%s3751_s4 + $0x228] sm:$0xff] }
  0x58   : > { %935 = vmatprep.subr.mxu0 %v2778_v4 }
  0xe4   : > { %v504_v42 = vpop.f32.mrf.mxu0 }
  0xe5   : > { %v505_v6 = vadd.f32 %v504_v42, %v418_v55 }
  0xe6   : > { %v506_v45 = vpop.f32.mrf.mxu0 }
  0xe7   : > { %v507_v1 = vadd.f32 %v506_v45, %v422_v50  ;;  %v527_v16 = vmul.f32 0.5, %v505_v6  ;;  %v2299_v6 = vld [vmem:[%s3751_s4 + $0x1a8] sm:$0xff] }
  0xe8   : > { %v510_v49 = vpop.f32.mrf.mxu0 }
  0xe9   : > { %v511_v63 = vadd.f32 %v510_v49, %v418_v55  ;;  %v528_v13 = vmul.f32 0.5, %v507_v1  ;;  %v2270_v49 = vld [vmem:[%s3748_s1 + $0x10] sm:$0xff]  ;;  %v2275_v1 = vld [vmem:[%s3751_s4 + $0xe8] sm:$0xff] }
  0xea   : > { %v512_v52 = vpop.f32.mrf.mxu0 }
  0xeb   : > { %v513_v53 = vadd.f32 %v512_v52, %v422_v50  ;;  %v529_v12 = vmul.f32 0.5, %v511_v63  ;;  %v2271_v52 = vld [vmem:[%s3748_s1 + $0x18] sm:$0xff] }
  0xec   : > { %v516_v56 = vpop.f32.mrf.mxu0  ;;  %v2277_v63 = vld [vmem:[%s3751_s4 + $0xf8] sm:$0xff] }
  0xed   : > { %v517_v58 = vadd.f32 %v516_v56, %v418_v55  ;;  %v530_v60 = vmul.f32 0.5, %v513_v53  ;;  %v2287_v53 = vld [vmem:[%s3751_s4 + $0x148] sm:$0xff]  ;;  %v2284_v56 = vld [vmem:[%s3751_s4 + $0x130] sm:$0xff] }
  0xee   : > { %v518_v59 = vpop.f32.mrf.mxu0 }
  0xef   : > { %v519_v61 = vadd.f32 %v518_v59, %v422_v50  ;;  %v531_v7 = vmul.f32 0.5, %v517_v58  ;;  %2748 = vtanh.f32 %v530_v60  ;;  %v2282_v58 = vld [vmem:[%s3751_s4 + $0x120] sm:$0xff]  ;;  %v2281_v59 = vld [vmem:[%s3751_s4 + $0x118] sm:$0xff]  ;;  %v2280_v60 = vld [vmem:[%s3751_s4 + $0x110] sm:$0xff] }
  0xf0   : > { %v522_v0 = vpop.f32.mrf.mxu0 }
  0xf1   : > { %v532_v2 = vmul.f32 0.5, %v519_v61  ;;  %v523_v3 = vadd.f32 %v522_v0, %v418_v55  ;;  %v2285_v55 = vld [vmem:[%s3751_s4 + $0x138] sm:$0xff]  ;;  %v2279_v61 = vld [vmem:[%s3751_s4 + $0x108] sm:$0xff]  ;;  %v2276_v0 = vld [vmem:[%s3751_s4 + $0xf0] sm:$0xff] }
  0xf2   : > { %v524_v8 = vpop.f32.mrf.mxu0 }
  0xf3   : > { %v533_v9 = vmul.f32 0.5, %v523_v3  ;;  %v525_v10 = vadd.f32 %v524_v8, %v422_v50  ;;  %2750 = vtanh.f32 %v532_v2  ;;  %v2289_v50 = vld [vmem:[%s3751_s4 + $0x158] sm:$0xff]  ;;  %v2274_v2 = vld [vmem:[%s3751_s4 + $0xe0] sm:$0xff] }
  0xf4   : > { %v2301_v3 = vld [vmem:[%s3751_s4 + $0x1b8] sm:$0xff] }
  0xf5   : > { %2752 = vtanh.f32 %v533_v9  ;;  %v534_v14 = vmul.f32 0.5, %v525_v10  ;;  %v2297_v8 = vld [vmem:[%s3751_s4 + $0x198] sm:$0xff]  ;;  %v2296_v9 = vld [vmem:[%s3751_s4 + $0x190] sm:$0xff]  ;;  %v2295_v10 = vld [vmem:[%s3751_s4 + $0x188] sm:$0xff] }
  0xf6   : > { %2754 = vtanh.f32 %v531_v7  ;;  %v2298_v7 = vld [vmem:[%s3751_s4 + $0x1a0] sm:$0xff] }
  0xf7   : > { %2756 = vtanh.f32 %v534_v14  ;;  %v2291_v14 = vld [vmem:[%s3751_s4 + $0x168] sm:$0xff] }
  0xf8   : > { %2758 = vtanh.f32 %v529_v12  ;;  %v2293_v12 = vld [vmem:[%s3751_s4 + $0x178] sm:$0xff] }
  0xf9   : > { %2760 = vtanh.f32 %v528_v13  ;;  %v2292_v13 = vld [vmem:[%s3751_s4 + $0x170] sm:$0xff] }
  0xfa   : > { %2762 = vtanh.f32 %v527_v16  ;;  %v662_v16 = vld [vmem:[%s3751_s4 + $0x88] sm:$0xff] }
  0xfb   : > { %936 = vmatpush2.msra.mxu0 %v662_v16 }
  0xfc   : > { %v2749_v22 = vpop.eup %2748  ;;  %937 = vmatprep.subr.mxu0 %v2778_v4 }
  0xfd   : > { %v546_v36 = vmul.f32 0.5, %v2749_v22  ;;  %938 = vmatpush2.msra.mxu0 %v661_v17  ;;  %v2324_v22 = vld [vmem:[%s3751_s4 + $0x230] sm:$0xff] }
  0xfe   : > { %1071 = vmatprep.subr.mxu0 %v2778_v4 }
  0xff   : > { %v3058_v43 = vadd.f32 0.5, %v546_v36  ;;  %v2317_v36 = vld [vmem:[%s3751_s4 + $0x1f8] sm:$0xff] }
 0x100   : > { %v2751_v23 = vpop.eup %2750 }
 0x101   : > { %v548_v31 = vmul.f32 0.5, %v2751_v23 }
 0x102   : > { %v2753_v25 = vpop.eup %2752 }
 0x103   : > { %v2755_v26 = vpop.eup %2754  ;;  %v549_v28 = vmul.f32 0.5, %v2753_v25  ;;  %v3052_v39 = vadd.f32 0.5, %v548_v31  ;;  %v2320_v31 = vld [vmem:[%s3751_s4 + $0x210] sm:$0xff] }
 0x104   : > { %v2757_v27 = vpop.eup %2756  ;;  %v547_v33 = vmul.f32 0.5, %v2755_v26  ;;  %v2322_v26 = vld [vmem:[%s3751_s4 + $0x220] sm:$0xff] }
 0x105   : > { %v2759_v29 = vpop.eup %2758  ;;  %v550_v30 = vmul.f32 0.5, %v2757_v27  ;;  %v3049_v37 = vadd.f32 0.5, %v549_v28  ;;  %v2321_v28 = vld [vmem:[%s3751_s4 + $0x218] sm:$0xff] }
 0x106   : > { %v2761_v32 = vpop.eup %2760  ;;  %v545_v38 = vmul.f32 0.5, %v2759_v29  ;;  %v3055_v41 = vadd.f32 0.5, %v547_v33  ;;  %v2319_v33 = vld [vmem:[%s3751_s4 + $0x208] sm:$0xff] }
 0x107   : > { %v2763_v34 = vpop.eup %2762  ;;  %v3047_v35 = vadd.f32 0.5, %v550_v30  ;;  %v544_v40 = vmul.f32 0.5, %v2761_v32  ;;  %v2306_v32 = vld [vmem:[%s3748_s1 + $0x20] sm:$0xff] }
 0x108   : > { %v543_v42 = vmul.f32 0.5, %v2763_v34  ;;  %v3061_v44 = vadd.f32 0.5, %v545_v38  ;;  %v2318_v34 = vld [vmem:[%s3751_s4 + $0x200] sm:$0xff]  ;;  %v2315_v38 = vld [vmem:[%s3751_s4 + $0x1e8] sm:$0xff] }
 0x109   : > { %592 = vmatprep.subr.mxu1 %v3047_v35  ;;  %v3064_v45 = vadd.f32 0.5, %v544_v40  ;;  %v2313_v40 = vld [vmem:[%s3751_s4 + $0x1d8] sm:$0xff] }
 0x10a   : > { %593 = vmatpush1.msra.mxu1 %v3049_v37  ;;  %v3067_v46 = vadd.f32 0.5, %v543_v42  ;;  %v2311_v42 = vld [vmem:[%s3751_s4 + $0x1c8] sm:$0xff] }
 0x10b   : > { %594 = vmatprep.subr.mxu1 %v3052_v39 }
 0x10c   : > { %595 = vmatpush1.msra.mxu1 %v3055_v41 }
 0x10d   : > { %596 = vmatprep.subr.mxu1 %v3058_v43 }
 0x10e   : > { %597 = vmatpush1.msra.mxu1 %v3061_v44 }
 0x10f   : > { %598 = vmatprep.subr.mxu1 %v3064_v45 }
 0x110   : > { %599 = vmatpush1.msra.mxu1 %v3067_v46 }
 0x111   : > { %2268 = vmatmul.mubr.msk.f32.vlgmr.msra.gmra.mxu1 %vm561_vm1, %v559_v47  ;;  %706 = vmatprep.subr.mxu1 %v3047_v35  ;;  %v2334_v47 = vld [vmem:[%s3751_s4 + $0x280] sm:$0xff] }
 0x112   : > { %707 = vmatpush1.msra.mxu1 %v3049_v37  ;;  %638 = vmatprep.mubr.f32.mxu1 %v2778_v4 }
 0x113   : > { %708 = vmatprep.subr.mxu1 %v3052_v39 }
 0x114   : > { %709 = vmatpush1.msra.mxu1 %v3055_v41 }
 0x115   : > { %2269 = vmatmul.mubr.msk.f32.gmra.mxu1 %vm561_vm1, %v560_v48  ;;  %710 = vmatprep.subr.mxu1 %v3058_v43  ;;  %v2333_v48 = vld [vmem:[%s3751_s4 + $0x278] sm:$0xff] }
 0x116   : > { %711 = vmatpush1.msra.mxu1 %v3061_v44  ;;  %746 = vmatprep.mubr.f32.mxu1 %v2778_v4 }
 0x117   : > { %712 = vmatprep.subr.mxu1 %v3064_v45 }
 0x118   : > { %713 = vmatpush1.msra.mxu1 %v3067_v46 }
 0x119   : > { %2272 = vmatmul.mubr.msk.f32.vlgmr.msra.gmra.mxu1 %vm561_vm1, %v2270_v49  ;;  %794 = vmatprep.subr.mxu1 %v2778_v4  ;;  %v2332_v49 = vld [vmem:[%s3751_s4 + $0x270] sm:$0xff] }
 0x11a   : > { %795 = vmatpush1.msra.mxu1 %v2289_v50  ;;  %752 = vmatprep.mubr.f32.mxu1 %v2778_v4  ;;  %v2331_v50 = vld [vmem:[%s3751_s4 + $0x268] sm:$0xff] }
 0x11b   : > { %796 = vmatprep.subr.mxu1 %v2778_v4 }
 0x11c   : > { %797 = vmatpush1.msra.mxu1 %v2288_v51  ;;  %v2330_v51 = vld [vmem:[%s3751_s4 + $0x260] sm:$0xff] }
 0x11d   : > { %2273 = vmatmul.mubr.msk.f32.gmra.mxu1 %vm561_vm1, %v2271_v52  ;;  %798 = vmatprep.subr.mxu1 %v2778_v4  ;;  %v2329_v52 = vld [vmem:[%s3751_s4 + $0x258] sm:$0xff] }
 0x11e   : > { %799 = vmatpush1.msra.mxu1 %v2287_v53  ;;  %v2328_v53 = vld [vmem:[%s3751_s4 + $0x250] sm:$0xff] }
 0x11f   : > { %800 = vmatprep.subr.mxu1 %v2778_v4 }
 0x120   : > { %801 = vmatpush1.msra.mxu1 %v2286_v54  ;;  %v2327_v54 = vld [vmem:[%s3751_s4 + $0x248] sm:$0xff] }
 0x121   : > { %802 = vmatprep.subr.mxu1 %v2778_v4 }
 0x122   : > { %803 = vmatpush1.msra.mxu1 %v2285_v55  ;;  %v2326_v55 = vld [vmem:[%s3751_s4 + $0x240] sm:$0xff] }
 0x123   : > { %804 = vmatprep.subr.mxu1 %v2778_v4 }
 0x124   : > { %805 = vmatpush1.msra.mxu1 %v2284_v56 }
 0x125   : > { %806 = vmatprep.subr.mxu1 %v2778_v4 }
 0x126   : > { %807 = vmatpush1.msra.mxu1 %v2283_v57 }
 0x127   : > { %808 = vmatprep.subr.mxu1 %v2778_v4 }
 0x128   : > { %809 = vmatpush1.msra.mxu1 %v2282_v58 }
 0x129   : > { %810 = vmatprep.subr.mxu1 %v2778_v4 }
 0x12a   : > { %811 = vmatpush1.msra.mxu1 %v2281_v59 }
 0x12b   : > { %812 = vmatprep.subr.mxu1 %v2778_v4 }
 0x12c   : > { %813 = vmatpush1.msra.mxu1 %v2280_v60 }
 0x12d   : > { %814 = vmatprep.subr.mxu1 %v2778_v4 }
 0x12e   : > { %815 = vmatpush1.msra.mxu1 %v2279_v61 }
 0x12f   : > { %816 = vmatprep.subr.mxu1 %v2778_v4 }
 0x130   : > { %817 = vmatpush1.msra.mxu1 %v2278_v62 }
 0x131   : > { %818 = vmatprep.subr.mxu1 %v2778_v4 }
 0x132   : > { %819 = vmatpush1.msra.mxu1 %v2277_v63 }
 0x133   : > { %820 = vmatprep.subr.mxu1 %v2778_v4 }
 0x134   : > { %821 = vmatpush1.msra.mxu1 %v2276_v0 }
 0x135   : > { %822 = vmatprep.subr.mxu1 %v2778_v4 }
 0x136   : > { %823 = vmatpush1.msra.mxu1 %v2275_v1 }
 0x137   : > { %824 = vmatprep.subr.mxu1 %v2778_v4 }
 0x138   : > { %825 = vmatpush1.msra.mxu1 %v2274_v2 }
 0x139   : > { %834 = vmatprep.subr.mxu1 %v2778_v4 }
 0x13a   : > { %835 = vmatpush2.msra.mxu1 %v2301_v3 }
 0x13b   : > { %836 = vmatprep.subr.mxu1 %v2778_v4 }
 0x13c   : > { %837 = vmatpush2.msra.mxu1 %v2300_v5 }
 0x13d   : > { %838 = vmatprep.subr.mxu1 %v2778_v4 }
 0x13e   : > { %839 = vmatpush2.msra.mxu1 %v2299_v6 }
 0x13f   : > { %840 = vmatprep.subr.mxu1 %v2778_v4 }
 0x140   : > { %841 = vmatpush2.msra.mxu1 %v2298_v7  ;;  %v2345_v7 = vld [vmem:[%s3752_s5 + $0x48] sm:$0x1] }
 0x141   : > { %842 = vmatprep.subr.mxu1 %v2778_v4 }
 0x142   : > { %843 = vmatpush2.msra.mxu1 %v2297_v8  ;;  %v2344_v8 = vld [vmem:[%s3752_s5 + $0x40] sm:$0xff] }
 0x143   : > { %844 = vmatprep.subr.mxu1 %v2778_v4 }
 0x144   : > { %845 = vmatpush2.msra.mxu1 %v2296_v9  ;;  %v2343_v9 = vld [vmem:[%s3752_s5 + $0x38] sm:$0xff] }
 0x145   : > { %846 = vmatprep.subr.mxu1 %v2778_v4 }
 0x146   : > { %847 = vmatpush2.msra.mxu1 %v2295_v10  ;;  %v2342_v10 = vld [vmem:[%s3752_s5 + $0x30] sm:$0xff] }
 0x147   : > { %848 = vmatprep.subr.mxu1 %v2778_v4 }
 0x148   : > { %849 = vmatpush2.msra.mxu1 %v2294_v11  ;;  %v2341_v11 = vld [vmem:[%s3752_s5 + $0x28] sm:$0xff] }
 0x149   : > { %850 = vmatprep.subr.mxu1 %v2778_v4 }
 0x14a   : > { %851 = vmatpush2.msra.mxu1 %v2293_v12  ;;  %v1161_v12 = vld [vmem:[%s3752_s5 + $0x20] sm:$0x1] }
 0x14b   : > { %852 = vmatprep.subr.mxu1 %v2778_v4 }
 0x14c   : > { %853 = vmatpush2.msra.mxu1 %v2292_v13 }
 0x14d   : > { %854 = vmatprep.subr.mxu1 %v2778_v4 }
 0x14e   : > { %855 = vmatpush2.msra.mxu1 %v2291_v14 }
 0x14f   : > { %856 = vmatprep.subr.mxu1 %v2778_v4 }
 0x150   : > { %857 = vmatpush2.msra.mxu1 %v2290_v15  ;;  %v2340_v15 = vld [vmem:[%s3755_s8] ss:$0 sm:$0xff] }
 0x151   : > { %983 = vmatprep.subr.mxu1 %v3047_v35  ;;  %v2307_v35 = vld [vmem:[%s3748_s1 + $0x28] sm:$0xff] }
 0x1d1   : > { %v634_v18 = vpop.f32.mrf.mxu1 }
 0x1d3   : > { %v636_v19 = vpop.f32.mrf.mxu1 }
 0x1d4   : > { %2304 = vmatprep.mubr.msk.f32.mxu0 %vm425_vm0, %v636_v19 }
 0x1d5   : > { %v640_v21 = vpop.f32.mrf.mxu1  ;;  %940 = vmatmul.mubr.f32.vlgmr.msra.gmra.mxu0 %v634_v18 }
 0x1d6   : > { %1072 = vmatpush1.msra.mxu0 %v2325_v20 }
 0x1d7   : > { %v642_v23 = vpop.f32.mrf.mxu1  ;;  %1073 = vmatprep.subr.mxu0 %v2778_v4 }
 0x1d8   : > { %2305 = vmatprep.mubr.msk.f32.mxu0 %vm425_vm0, %v642_v23  ;;  %1074 = vmatpush1.msra.mxu0 %v2324_v22 }
 0x1d9   : > { %v748_v25 = vpop.f32.mrf.mxu1  ;;  %945 = vmatmul.mubr.f32.gmra.mxu0 %v640_v21  ;;  %1075 = vmatprep.subr.mxu0 %v2778_v4 }
 0x1da   : > { %1076 = vmatpush1.msra.mxu0 %v2323_v24 }
 0x1db   : > { %v750_v27 = vpop.f32.mrf.mxu1  ;;  %1077 = vmatprep.subr.mxu0 %v2778_v4 }
 0x1dc   : > { %2302 = vmatprep.mubr.msk.f32.mxu1 %vm425_vm0, %v750_v27  ;;  %1078 = vmatpush1.msra.mxu0 %v2322_v26  ;;  %v1159_v26 = vld [vmem:[%s3752_s5 + $0x10] sm:$0xff]  ;;  %v1158_v27 = vld [vmem:[%s3752_s5 + $0x8] sm:$0xff] }
 0x1dd   : > { %v754_v29 = vpop.f32.mrf.mxu1  ;;  %859 = vmatmul.mubr.f32.vlgmr.msra.gmra.mxu1 %v748_v25  ;;  %1079 = vmatprep.subr.mxu0 %v2778_v4  ;;  %v1160_v25 = vld [vmem:[%s3752_s5 + $0x18] sm:$0xff] }
 0x1de   : > { %984 = vmatpush1.msra.mxu1 %v3049_v37  ;;  %1080 = vmatpush1.msra.mxu0 %v2321_v28  ;;  %v2316_v37 = vld [vmem:[%s3751_s4 + $0x1f0] sm:$0xff]  ;;  %v1157_v28 = vld [vmem:[%s3752_s5] sm:$0xff] }
 0x1df   : > { %985 = vmatprep.subr.mxu1 %v3052_v39  ;;  %v756_v30 = vpop.f32.mrf.mxu1  ;;  %1081 = vmatprep.subr.mxu0 %v2778_v4  ;;  %v2314_v39 = vld [vmem:[%s3751_s4 + $0x1e0] sm:$0xff] }
 0x1e0   : > { %986 = vmatpush1.msra.mxu1 %v3055_v41  ;;  %2303 = vmatprep.mubr.msk.f32.mxu1 %vm425_vm0, %v756_v30  ;;  %v2312_v41 = vld [vmem:[%s3751_s4 + $0x1d0] sm:$0xff] }
 0x1e1   : > { %987 = vmatprep.subr.mxu1 %v3058_v43  ;;  %864 = vmatmul.mubr.f32.gmra.mxu1 %v754_v29  ;;  %v2310_v43 = vld [vmem:[%s3751_s4 + $0x1c0] sm:$0xff] }
 0x1e2   : > { %988 = vmatpush1.msra.mxu1 %v3061_v44  ;;  %1023 = vmatprep.mubr.f32.mxu1 %v2778_v4  ;;  %v2337_v44 = vld [vmem:[%s3751_s4 + $0x298] sm:$0xff] }
 0x1e3   : > { %989 = vmatprep.subr.mxu1 %v3064_v45  ;;  %1082 = vmatpush1.msra.mxu0 %v2320_v31  ;;  %v2336_v45 = vld [vmem:[%s3751_s4 + $0x290] sm:$0xff] }
 0x1e4   : > { %990 = vmatpush1.msra.mxu1 %v3067_v46  ;;  %1083 = vmatprep.subr.mxu0 %v2778_v4  ;;  %v2335_v46 = vld [vmem:[%s3751_s4 + $0x288] sm:$0xff] }
 0x1e5   : > { %2308 = vmatmul.mubr.msk.f32.vlgmr.msra.gmra.mxu1 %vm561_vm1, %v2306_v32  ;;  %1084 = vmatpush1.msra.mxu0 %v2319_v33  ;;  %v2352_v32 = vld [vmem:[%s3756_s9] ss:$0 sm:$0xff] }
 0x1e6   : > { %1029 = vmatprep.mubr.f32.mxu1 %v2778_v4  ;;  %1085 = vmatprep.subr.mxu0 %v2778_v4 }
 0x1e7   : > { %1086 = vmatpush1.msra.mxu0 %v2318_v34  ;;  %2532 = vmatprep.subr.msk.mxu1 %vm1179_vm2, %v2345_v7 }
 0x1e8   : > { %1087 = vmatprep.subr.mxu0 %v2778_v4  ;;  %2533 = vmatpush3.msk.msra.mxu1 %vm1179_vm2, %v2345_v7  ;;  %v1442_v7 = vld [vmem:[%s3753_s6 + $0x38] sm:$0xff] }
 0x1e9   : > { %2309 = vmatmul.mubr.msk.f32.gmra.mxu1 %vm561_vm1, %v2307_v35  ;;  %1088 = vmatpush1.msra.mxu0 %v2317_v36 }
 0x1ea   : > { %1089 = vmatprep.subr.mxu0 %v2778_v4  ;;  %2534 = vmatprep.subr.mxu1 %v2344_v8 }
 0x1eb   : > { %1090 = vmatpush1.msra.mxu0 %v2316_v37  ;;  %2535 = vmatpush3.msra.mxu1 %v2344_v8  ;;  %v1441_v8 = vld [vmem:[%s3753_s6 + $0x30] sm:$0xff] }
 0x1ec   : > { %1091 = vmatprep.subr.mxu0 %v2778_v4  ;;  %2536 = vmatprep.subr.mxu1 %v2343_v9 }
 0x1ed   : > { %1092 = vmatpush1.msra.mxu0 %v2315_v38  ;;  %2537 = vmatpush3.msra.mxu1 %v2343_v9  ;;  %v1440_v9 = vld [vmem:[%s3753_s6 + $0x28] sm:$0xff] }
 0x1ee   : > { %1093 = vmatprep.subr.mxu0 %v2778_v4  ;;  %2538 = vmatprep.subr.mxu1 %v2342_v10 }
 0x1ef   : > { %1094 = vmatpush1.msra.mxu0 %v2314_v39  ;;  %2539 = vmatpush3.msra.mxu1 %v2342_v10  ;;  %v1439_v10 = vld [vmem:[%s3753_s6 + $0x20] sm:$0xff] }
 0x1f0   : > { %1095 = vmatprep.subr.mxu0 %v2778_v4  ;;  %2540 = vmatprep.subr.mxu1 %v2341_v11 }
 0x1f1   : > { %1096 = vmatpush1.msra.mxu0 %v2313_v40  ;;  %2541 = vmatpush3.msra.mxu1 %v2341_v11  ;;  %v1438_v11 = vld [vmem:[%s3753_s6 + $0x18] sm:$0xff] }
 0x1f2   : > { %1097 = vmatprep.subr.mxu0 %v2778_v4  ;;  %2545 = vmatprep.subr.msk.mxu1 %vm1179_vm2, %v1161_v12 }
 0x1f3   : > { %1098 = vmatpush1.msra.mxu0 %v2312_v41 }
 0x1f4   : > { %1099 = vmatprep.subr.mxu0 %v2778_v4 }
 0x1f5   : > { %1100 = vmatpush1.msra.mxu0 %v2311_v42 }
 0x1f6   : > { %1101 = vmatprep.subr.mxu0 %v2778_v4 }
 0x1f7   : > { %1102 = vmatpush1.msra.mxu0 %v2310_v43 }
 0x1f8   : > { %1111 = vmatprep.subr.mxu0 %v2778_v4 }
 0x1f9   : > { %1112 = vmatpush2.msra.mxu0 %v2337_v44 }
 0x1fa   : > { %1113 = vmatprep.subr.mxu0 %v2778_v4 }
 0x1fb   : > { %1114 = vmatpush2.msra.mxu0 %v2336_v45 }
 0x1fc   : > { %1115 = vmatprep.subr.mxu0 %v2778_v4 }
 0x1fd   : > { %1116 = vmatpush2.msra.mxu0 %v2335_v46  ;;  %v1357_v46 = vld [vmem:[%s3749_s2] sm:$0x7f] }
 0x1fe   : > { %1117 = vmatprep.subr.mxu0 %v2778_v4 }
 0x1ff   : > { %1118 = vmatpush2.msra.mxu0 %v2334_v47  ;;  %v2355_v47 = vld [vmem:[%s3749_s2 + $0x8] sm:$0x7f] }
 0x200   : > { %1119 = vmatprep.subr.mxu0 %v2778_v4 }
 0x201   : > { %1120 = vmatpush2.msra.mxu0 %v2333_v48  ;;  %v2370_v48 = vld [vmem:[%s3753_s6 + $0xc8] sm:$0xf] }
 0x202   : > { %1121 = vmatprep.subr.mxu0 %v2778_v4 }
 0x203   : > { %1122 = vmatpush2.msra.mxu0 %v2332_v49  ;;  %v2369_v49 = vld [vmem:[%s3753_s6 + $0xc0] sm:$0xff] }
 0x204   : > { %1123 = vmatprep.subr.mxu0 %v2778_v4 }
 0x205   : > { %1124 = vmatpush2.msra.mxu0 %v2331_v50  ;;  %v2368_v50 = vld [vmem:[%s3753_s6 + $0xb8] sm:$0xff] }
 0x206   : > { %1125 = vmatprep.subr.mxu0 %v2778_v4 }
 0x207   : > { %1126 = vmatpush2.msra.mxu0 %v2330_v51  ;;  %v2367_v51 = vld [vmem:[%s3753_s6 + $0xb0] sm:$0xff] }
 0x208   : > { %1127 = vmatprep.subr.mxu0 %v2778_v4 }
 0x209   : > { %1128 = vmatpush2.msra.mxu0 %v2329_v52  ;;  %v2366_v52 = vld [vmem:[%s3753_s6 + $0xa8] sm:$0xff] }
 0x20a   : > { %1129 = vmatprep.subr.mxu0 %v2778_v4 }
 0x20b   : > { %1130 = vmatpush2.msra.mxu0 %v2328_v53  ;;  %v2365_v53 = vld [vmem:[%s3753_s6 + $0xa0] sm:$0xff] }
 0x20c   : > { %1131 = vmatprep.subr.mxu0 %v2778_v4 }
 0x20d   : > { %1132 = vmatpush2.msra.mxu0 %v2327_v54  ;;  %v2364_v54 = vld [vmem:[%s3753_s6 + $0x98] sm:$0xff] }
 0x20e   : > { %1133 = vmatprep.subr.mxu0 %v2778_v4 }
 0x20f   : > { %1134 = vmatpush2.msra.mxu0 %v2326_v55  ;;  %v2363_v55 = vld [vmem:[%s3753_s6 + $0x90] sm:$0xff] }
 0x210   : > { %2637 = vmatprep.subr.mxu0 %v2778_v4 }
 0x295   : > { %v941_v56 = vpop.f32.mrf.mxu0 }
 0x297   : > { %v943_v57 = vpop.f32.mrf.mxu0 }
 0x298   : > { %v2361_v57 = vld [vmem:[%s3753_s6 + $0x80] sm:$0xff] }
 0x299   : > { %v946_v58 = vpop.f32.mrf.mxu0 }
 0x29b   : > { %v948_v59 = vpop.f32.mrf.mxu0 }
 0x29c   : > { %v2359_v59 = vld [vmem:[%s3753_s6 + $0x70] sm:$0xff] }
 0x29d   : > { %v860_v60 = vpop.f32.mrf.mxu1 }
 0x29e   : > { %v942_v61 = vadd.f32 %v941_v56, %v860_v60  ;;  %v2362_v56 = vld [vmem:[%s3753_s6 + $0x88] sm:$0xff] }
 0x29f   : > { %v862_v62 = vpop.f32.mrf.mxu1  ;;  %v2358_v60 = vld [vmem:[%s3753_s6 + $0x68] sm:$0xff] }
 0x2a1   : > { %v865_v63 = vpop.f32.mrf.mxu1 }
 0x2a2   : > { %v947_v0 = vadd.f32 %v946_v58, %v865_v63  ;;  %v2360_v58 = vld [vmem:[%s3753_s6 + $0x78] sm:$0xff]  ;;  %v1447_v63 = vld [vmem:[%s3753_s6 + $0x60] sm:$0xf] }
 0x2a3   : > { %v867_v1 = vpop.f32.mrf.mxu1 }
 0x2a4   : > { %v1446_v1 = vld [vmem:[%s3753_s6 + $0x58] sm:$0xff] }
 0x2a5   : > { %v1025_v2 = vpop.f32.mrf.mxu1 }
 0x2a7   : > { %v1027_v3 = vpop.f32.mrf.mxu1 }
 0x2a8   : > { %2338 = vmatprep.mubr.msk.f32.mxu0 %vm425_vm0, %v1027_v3  ;;  %v1445_v3 = vld [vmem:[%s3753_s6 + $0x50] sm:$0xff] }
 0x2a9   : > { %v1031_v5 = vpop.f32.mrf.mxu1  ;;  %1136 = vmatmul.mubr.f32.vlgmr.msra.gmra.mxu0 %v1025_v2 }
 0x2ab   : > { %v1033_v6 = vpop.f32.mrf.mxu1 }
 0x2ac   : > { %2339 = vmatprep.mubr.msk.f32.mxu0 %vm425_vm0, %v1033_v6  ;;  %v1443_v6 = vld [vmem:[%s3753_s6 + $0x40] sm:$0xff] }
 0x2ad   : > { %1141 = vmatmul.mubr.f32.gmra.mxu0 %v1031_v5  ;;  %v1444_v5 = vld [vmem:[%s3753_s6 + $0x48] sm:$0xff] }
 0x2ae   : > { %2663 = vmatprep.mubr.msk.f32.mxu0 %vm2779_vm5, %v2778_v4 }
 0x369   : > { %v1137_v13 = vpop.f32.mrf.mxu0 }
 0x36a   : > { %v1146_v14 = vadd.f32 %v1137_v13, %v942_v61  ;;  %v1436_v13 = vld [vmem:[%s3753_s6 + $0x8] sm:$0xff] }
 0x36b   : > { %v1139_v16 = vpop.f32.mrf.mxu0 }
 0x36c   : > { %v1155_v18 = vadd.f32 %v2340_v15, %v1146_v14  ;;  %v1435_v14 = vld [vmem:[%s3753_s6] sm:$0xff]  ;;  %v2393_v16 = vld [vmem:[%s3749_s2 + $0x18] sm:$0x7f] }
 0x36d   : > { %v1142_v17 = vpop.f32.mrf.mxu0 }
 0x36e   : > { %v1147_v19 = vadd.f32 %v1142_v17, %v947_v0  ;;  %v1171_v22 = vrot.slane %v1155_v18, 1  ;;  %v2390_v17 = vld [vmem:[%s3753_s6 + $0x130] sm:$0xf] }
 0x36f   : > { %v1144_v20 = vpop.f32.mrf.mxu0  ;;  %2638 = vmatpush3.msk.msra.mxu0 %vm1541_vm7, %v2390_v17 }
 0x370   : > { %v1156_v21 = vadd.f32 %v2340_v15, %v1147_v19  ;;  %v2375_v15 = vld [vmem:[%s3749_s2 + $0x10] sm:$0x7f]  ;;  %v2408_v19 = vld [vmem:[%s3753_s6 + $0x198] sm:$0xf]  ;;  %2639 = vmatprep.subr.mxu0 %v2778_v4 }
 0x371   : > { %v2407_v20 = vld [vmem:[%s3753_s6 + $0x190] sm:$0xff] }
 0x372   : > { %v1172_v23 = vrot.slane %v1156_v21, 1 }
 0x374   : > { %v1173_v24 = vsel %vm1170_vm3, %v1171_v22, %v1172_v23  ;;  %v2406_v22 = vld [vmem:[%s3753_s6 + $0x188] sm:$0xff] }
 0x375   : > { %2542 = vmatprep.mubr.msk.f32.mxu1 %vm1174_vm4, %v1173_v24  ;;  %v2405_v24 = vld [vmem:[%s3753_s6 + $0x180] sm:$0xff] }
 0x376   : > { %2543 = vmatmul.mubr.msk.f32.vlgmr.msra.gmra.mxu1 %vm1174_vm4, %v1172_v23  ;;  %v2387_v23 = vld [vmem:[%s3753_s6 + $0x118] sm:$0xff] }
 0x377   : > { %2546 = vmatpush3.msk.msra.mxu1 %vm1179_vm2, %v1161_v12  ;;  %2555 = vmatprep.mubr.msk.f32.mxu1 %vm1174_vm4, %v1155_v18  ;;  %v1437_v12 = vld [vmem:[%s3753_s6 + $0x10] sm:$0xff]  ;;  %v2389_v18 = vld [vmem:[%s3753_s6 + $0x128] sm:$0xff] }
 0x378   : > { %2547 = vmatprep.subr.mxu1 %v1160_v25  ;;  %2640 = vmatpush3.msra.mxu0 %v2389_v18 }
 0x379   : > { %2548 = vmatpush3.msra.mxu1 %v1160_v25  ;;  %2641 = vmatprep.subr.mxu0 %v2778_v4  ;;  %v2386_v25 = vld [vmem:[%s3753_s6 + $0x110] sm:$0xff] }
 0x37a   : > { %2549 = vmatprep.subr.mxu1 %v1159_v26 }
 0x37b   : > { %2550 = vmatpush3.msra.mxu1 %v1159_v26  ;;  %v2404_v26 = vld [vmem:[%s3753_s6 + $0x178] sm:$0xff] }
 0x37c   : > { %2551 = vmatprep.subr.mxu1 %v1158_v27 }
 0x37d   : > { %2552 = vmatpush3.msra.mxu1 %v1158_v27  ;;  %v2385_v27 = vld [vmem:[%s3753_s6 + $0x108] sm:$0xff] }
 0x37e   : > { %2553 = vmatprep.subr.mxu1 %v1157_v28 }
 0x37f   : > { %2554 = vmatpush3.msra.mxu1 %v1157_v28  ;;  %v2403_v28 = vld [vmem:[%s3753_s6 + $0x170] sm:$0xff] }
 0x380   : > { %2556 = vmatmul.mubr.msk.f32.vlgmr.msra.gmra.mxu1 %vm1174_vm4, %v1156_v21  ;;  %2558 = vmatprep.subr.mxu1 %v2778_v4  ;;  %v2388_v21 = vld [vmem:[%s3753_s6 + $0x120] sm:$0xff] }
 0x381   : > { %2562 = vmatprep.mubr.msk.f32.mxu1 %vm2779_vm5, %v2778_v4  ;;  %2642 = vmatpush3.msra.mxu0 %v2388_v21 }
 0x382   : > { %2643 = vmatprep.subr.mxu0 %v2778_v4 }
 0x383   : > { %2644 = vmatpush3.msra.mxu0 %v2387_v23 }
 0x384   : > { %2645 = vmatprep.subr.mxu0 %v2778_v4 }
 0x385   : > { %2646 = vmatpush3.msra.mxu0 %v2386_v25 }
 0x386   : > { %2647 = vmatprep.subr.mxu0 %v2778_v4 }
 0x387   : > { %2648 = vmatpush3.msra.mxu0 %v2385_v27 }
 0x388   : > { %2649 = vmatprep.subr.mxu0 %v2778_v4 }
 0x436   : > { %v2544_v29 = vpop.f32.mrf.mxu1 }
 0x438   : > { %v1249_v30 = vpop.f32.mrf.mxu1 }
 0x440   : > { %v2557_v31 = vpop.f32.mrf.mxu1 }
 0x441   : > { %v1337_v33 = vadd.f32 %v2557_v31, %v2544_v29  ;;  %v2384_v29 = vld [vmem:[%s3753_s6 + $0x100] sm:$0xff]  ;;  %v2383_v31 = vld [vmem:[%s3753_s6 + $0xf8] sm:$0xff] }
 0x442   : > { %v1331_v34 = vpop.f32.mrf.mxu1  ;;  %2650 = vmatpush3.msra.mxu0 %v2384_v29 }
 0x443   : > { %v1348_v35 = vadd.f32 %v2352_v32, %v1337_v33  ;;  %v1332_v36 = vadd.f32 %v1331_v34, %v1249_v30  ;;  %v2402_v30 = vld [vmem:[%s3753_s6 + $0x168] sm:$0xff]  ;;  %2651 = vmatprep.subr.mxu0 %v2778_v4  ;;  %v2382_v33 = vld [vmem:[%s3753_s6 + $0xf0] sm:$0xff] }
 0x444   : > { %2652 = vmatpush3.msra.mxu0 %v2383_v31  ;;  %v2381_v34 = vld [vmem:[%s3753_s6 + $0xe8] sm:$0xff] }
 0x445   : > { %v1350_v37 = vmul.f32 0.5, %v1348_v35  ;;  %v1347_v38 = vadd.f32 %v2352_v32, %v1332_v36  ;;  %v2401_v32 = vld [vmem:[%s3753_s6 + $0x160] sm:$0xff]  ;;  %2653 = vmatprep.subr.mxu0 %v2778_v4  ;;  %v2400_v36 = vld [vmem:[%s3753_s6 + $0x158] sm:$0xff] }
 0x446   : > { %2654 = vmatpush3.msra.mxu0 %v2382_v33  ;;  %v2380_v35 = vld [vmem:[%s3753_s6 + $0xe0] sm:$0xff] }
 0x447   : > { %2764 = vtanh.f32 %v1350_v37  ;;  %v1349_v39 = vmul.f32 0.5, %v1347_v38  ;;  %2655 = vmatprep.subr.mxu0 %v2778_v4  ;;  %v2379_v37 = vld [vmem:[%s3753_s6 + $0xd8] sm:$0xff]  ;;  %v2399_v38 = vld [vmem:[%s3753_s6 + $0x150] sm:$0xff] }
 0x448   : > { %2656 = vmatpush3.msra.mxu0 %v2381_v34 }
 0x449   : > { %2766 = vtanh.f32 %v1349_v39  ;;  %2657 = vmatprep.subr.mxu0 %v2778_v4  ;;  %v2378_v39 = vld [vmem:[%s3753_s6 + $0xd0] sm:$0xff] }
 0x44a   : > { %2658 = vmatpush3.msra.mxu0 %v2380_v35 }
 0x44b   : > { %2659 = vmatprep.subr.mxu0 %v2778_v4 }
 0x44c   : > { %2660 = vmatpush3.msra.mxu0 %v2379_v37 }
 0x44d   : > { %2661 = vmatprep.subr.mxu0 %v2778_v4 }
 0x44e   : > { %2662 = vmatpush3.msra.mxu0 %v2378_v39 }
 0x44f   : > { %2702 = vmatprep.subr.mxu0 %v2778_v4 }
 0x454   : > { %v2765_v40 = vpop.eup %2764 }
 0x455   : > { %v1354_v41 = vmul.f32 0.5, %v2765_v40  ;;  %v2398_v40 = vld [vmem:[%s3753_s6 + $0x148] sm:$0xff] }
 0x456   : > { %v2767_v42 = vpop.eup %2766 }
 0x457   : > { %v3404_v43 = vadd.f32 0.5, %v1354_v41  ;;  %v1353_v44 = vmul.f32 0.5, %v2767_v42  ;;  %v2397_v41 = vld [vmem:[%s3753_s6 + $0x140] sm:$0xff]  ;;  %v2396_v42 = vld [vmem:[%s3753_s6 + $0x138] sm:$0xff] }
 0x459   : > { %v3406_v45 = vadd.f32 0.5, %v1353_v44  ;;  %2559 = vmatpush3.msk.msra.mxu1 %vm1170_vm3, %v3404_v43 }
 0x45a   : > { %2560 = vmatprep.subr.mxu1 %v2778_v4 }
 0x45b   : > { %2561 = vmatpush3.msra.mxu1 %v3406_v45 }
 0x45c   : > { %2563 = vmatmul.mubr.msk.f32.vlgmr.msra.gmra.mxu1 %vm1358_vm6, %v1357_v46  ;;  %2565 = vmatprep.subr.mxu1 %v2778_v4 }
 0x45d   : > { %2566 = vmatpush3.msk.msra.mxu1 %vm1170_vm3, %v3404_v43  ;;  %2569 = vmatprep.mubr.msk.f32.mxu1 %vm2779_vm5, %v2778_v4 }
 0x45e   : > { %2567 = vmatprep.subr.mxu1 %v2778_v4 }
 0x45f   : > { %2568 = vmatpush3.msra.mxu1 %v3406_v45 }
 0x460   : > { %2570 = vmatmul.mubr.msk.f32.vlgmr.msra.gmra.mxu1 %vm1358_vm6, %v2355_v47  ;;  %2572 = vmatprep.subr.mxu1 %v2778_v4 }
 0x461   : > { %2573 = vmatpush3.msk.msra.mxu1 %vm1541_vm7, %v2370_v48  ;;  %2598 = vmatprep.mubr.msk.f32.mxu1 %vm2779_vm5, %v2778_v4 }
 0x462   : > { %2574 = vmatprep.subr.mxu1 %v2778_v4 }
 0x463   : > { %2575 = vmatpush3.msra.mxu1 %v2369_v49 }
 0x464   : > { %2576 = vmatprep.subr.mxu1 %v2778_v4 }
 0x465   : > { %2577 = vmatpush3.msra.mxu1 %v2368_v50 }
 0x466   : > { %2578 = vmatprep.subr.mxu1 %v2778_v4 }
 0x467   : > { %2579 = vmatpush3.msra.mxu1 %v2367_v51 }
 0x468   : > { %2580 = vmatprep.subr.mxu1 %v2778_v4 }
 0x469   : > { %2581 = vmatpush3.msra.mxu1 %v2366_v52  ;;  %v2411_v52 = vld [vmem:[%s3749_s2 + $0x20] sm:$0x7f] }
 0x46a   : > { %2582 = vmatprep.subr.mxu1 %v2778_v4 }
 0x46b   : > { %2583 = vmatpush3.msra.mxu1 %v2365_v53 }
 0x46c   : > { %2584 = vmatprep.subr.mxu1 %v2778_v4 }
 0x46d   : > { %2585 = vmatpush3.msra.mxu1 %v2364_v54  ;;  %v2426_v54 = vld [vmem:[%s3753_s6 + $0x200] sm:$0xf] }
 0x46e   : > { %2586 = vmatprep.subr.mxu1 %v2778_v4 }
 0x46f   : > { %2587 = vmatpush3.msra.mxu1 %v2363_v55 }
 0x470   : > { %2588 = vmatprep.subr.mxu1 %v2778_v4 }
 0x471   : > { %2589 = vmatpush3.msra.mxu1 %v2362_v56  ;;  %v2423_v56 = vld [vmem:[%s3753_s6 + $0x1e8] sm:$0xff] }
 0x472   : > { %2590 = vmatprep.subr.mxu1 %v2778_v4 }
 0x473   : > { %2591 = vmatpush3.msra.mxu1 %v2361_v57  ;;  %v2422_v57 = vld [vmem:[%s3753_s6 + $0x1e0] sm:$0xff] }
 0x474   : > { %2592 = vmatprep.subr.mxu1 %v2778_v4 }
 0x475   : > { %2593 = vmatpush3.msra.mxu1 %v2360_v58  ;;  %v2421_v58 = vld [vmem:[%s3753_s6 + $0x1d8] sm:$0xff] }
 0x476   : > { %2594 = vmatprep.subr.mxu1 %v2778_v4 }
 0x477   : > { %2595 = vmatpush3.msra.mxu1 %v2359_v59  ;;  %v2420_v59 = vld [vmem:[%s3753_s6 + $0x1d0] sm:$0xff] }
 0x478   : > { %2596 = vmatprep.subr.mxu1 %v2778_v4 }
 0x479   : > { %2597 = vmatpush3.msra.mxu1 %v2358_v60  ;;  %v2419_v60 = vld [vmem:[%s3753_s6 + $0x1c8] sm:$0xff] }
 0x47a   : > { %2601 = vmatprep.subr.mxu1 %v2778_v4 }
 0x51c   : > { %v1431_v61 = vpop.f32.mrf.mxu1 }
 0x51e   : > { %v2564_v62 = vpop.f32.mrf.mxu1 }
 0x51f   : > { %v2417_v62 = vld [vmem:[%s3753_s6 + $0x1b8] sm:$0xff] }
 0x520   : > { %v1519_v0 = vpop.f32.mrf.mxu1 }
 0x521   : > { %2599 = vmatmul.mubr.msk.f32.vlgmr.msra.gmra.mxu1 %vm1537_vm8, %v1519_v0  ;;  %v2415_v0 = vld [vmem:[%s3753_s6 + $0x1a8] sm:$0xff] }
 0x522   : > { %2602 = vmatpush3.msk.msra.mxu1 %vm1541_vm7, %v1447_v63  ;;  %v2571_v2 = vpop.f32.mrf.mxu1  ;;  %2627 = vmatprep.mubr.msk.f32.mxu1 %vm2779_vm5, %v2778_v4  ;;  %v2416_v63 = vld [vmem:[%s3753_s6 + $0x1b0] sm:$0xff] }
 0x523   : > { %2603 = vmatprep.subr.mxu1 %v2778_v4 }
 0x524   : > { %2604 = vmatpush3.msra.mxu1 %v1446_v1  ;;  %v2414_v1 = vld [vmem:[%s3753_s6 + $0x1a0] sm:$0xff] }
 0x525   : > { %2605 = vmatprep.subr.mxu1 %v2778_v4 }
 0x526   : > { %2606 = vmatpush3.msra.mxu1 %v1445_v3 }
 0x527   : > { %2607 = vmatprep.subr.mxu1 %v2778_v4 }
 0x528   : > { %2608 = vmatpush3.msra.mxu1 %v1444_v5 }
 0x529   : > { %2609 = vmatprep.subr.mxu1 %v2778_v4 }
 0x52a   : > { %2610 = vmatpush3.msra.mxu1 %v1443_v6 }
 0x52b   : > { %2611 = vmatprep.subr.mxu1 %v2778_v4 }
 0x52c   : > { %2612 = vmatpush3.msra.mxu1 %v1442_v7 }
 0x52d   : > { %2613 = vmatprep.subr.mxu1 %v2778_v4 }
 0x52e   : > { %2614 = vmatpush3.msra.mxu1 %v1441_v8 }
 0x52f   : > { %2615 = vmatprep.subr.mxu1 %v2778_v4 }
 0x530   : > { %2616 = vmatpush3.msra.mxu1 %v1440_v9 }
 0x531   : > { %2617 = vmatprep.subr.mxu1 %v2778_v4 }
 0x532   : > { %2618 = vmatpush3.msra.mxu1 %v1439_v10 }
 0x533   : > { %2619 = vmatprep.subr.mxu1 %v2778_v4 }
 0x534   : > { %2620 = vmatpush3.msra.mxu1 %v1438_v11 }
 0x535   : > { %2621 = vmatprep.subr.mxu1 %v2778_v4 }
 0x536   : > { %2622 = vmatpush3.msra.mxu1 %v1437_v12 }
 0x537   : > { %2623 = vmatprep.subr.mxu1 %v2778_v4 }
 0x538   : > { %2624 = vmatpush3.msra.mxu1 %v1436_v13 }
 0x539   : > { %2625 = vmatprep.subr.mxu1 %v2778_v4 }
 0x53a   : > { %2626 = vmatpush3.msra.mxu1 %v1435_v14 }
 0x53b   : > { %2628 = vmatmul.mubr.msk.f32.vlgmr.msra.gmra.mxu1 %vm1537_vm8, %v1431_v61  ;;  %2630 = vmatprep.subr.mxu1 %v2778_v4  ;;  %v2418_v61 = vld [vmem:[%s3753_s6 + $0x1c0] sm:$0xff] }
 0x53c   : > { %2631 = vmatpush3.msk.msra.mxu1 %vm1170_vm3, %v3404_v43  ;;  %2634 = vmatprep.mubr.msk.f32.mxu1 %vm2779_vm5, %v2778_v4 }
 0x53d   : > { %2632 = vmatprep.subr.mxu1 %v2778_v4 }
 0x53e   : > { %2633 = vmatpush3.msra.mxu1 %v3406_v45 }
 0x53f   : > { %2635 = vmatmul.mubr.msk.f32.vlgmr.msra.gmra.mxu1 %vm1358_vm6, %v2375_v15  ;;  %2666 = vmatprep.subr.mxu1 %v2778_v4 }
 0x540   : > { %2667 = vmatpush3.msk.msra.mxu1 %vm1170_vm3, %v3404_v43  ;;  %2670 = vmatprep.mubr.msk.f32.mxu1 %vm2779_vm5, %v2778_v4 }
 0x541   : > { %2668 = vmatprep.subr.mxu1 %v2778_v4 }
 0x542   : > { %2669 = vmatpush3.msra.mxu1 %v3406_v45 }
 0x543   : > { %2671 = vmatmul.mubr.msk.f32.vlgmr.msra.gmra.mxu1 %vm1358_vm6, %v2393_v16  ;;  %2673 = vmatprep.subr.mxu1 %v2778_v4 }
 0x544   : > { %2699 = vmatprep.mubr.msk.f32.mxu1 %vm2779_vm5, %v2778_v4  ;;  %2674 = vmatpush3.msk.msra.mxu1 %vm1541_vm7, %v2408_v19 }
 0x545   : > { %2675 = vmatprep.subr.mxu1 %v2778_v4 }
 0x546   : > { %2676 = vmatpush3.msra.mxu1 %v2407_v20 }
 0x547   : > { %2677 = vmatprep.subr.mxu1 %v2778_v4 }
 0x548   : > { %2678 = vmatpush3.msra.mxu1 %v2406_v22 }
 0x549   : > { %2679 = vmatprep.subr.mxu1 %v2778_v4 }
 0x54a   : > { %2680 = vmatpush3.msra.mxu1 %v2405_v24 }
 0x54b   : > { %2681 = vmatprep.subr.mxu1 %v2778_v4 }
 0x54c   : > { %2682 = vmatpush3.msra.mxu1 %v2404_v26 }
 0x54d   : > { %2683 = vmatprep.subr.mxu1 %v2778_v4 }
 0x54e   : > { %2684 = vmatpush3.msra.mxu1 %v2403_v28 }
 0x54f   : > { %2685 = vmatprep.subr.mxu1 %v2778_v4 }
 0x550   : > { %2686 = vmatpush3.msra.mxu1 %v2402_v30 }
 0x551   : > { %2687 = vmatprep.subr.mxu1 %v2778_v4 }
 0x552   : > { %2688 = vmatpush3.msra.mxu1 %v2401_v32 }
 0x553   : > { %2689 = vmatprep.subr.mxu1 %v2778_v4 }
 0x554   : > { %2690 = vmatpush3.msra.mxu1 %v2400_v36 }
 0x555   : > { %2691 = vmatprep.subr.mxu1 %v2778_v4 }
 0x556   : > { %2692 = vmatpush3.msra.mxu1 %v2399_v38 }
 0x557   : > { %2693 = vmatprep.subr.mxu1 %v2778_v4 }
 0x558   : > { %2694 = vmatpush3.msra.mxu1 %v2398_v40 }
 0x559   : > { %2695 = vmatprep.subr.mxu1 %v2778_v4 }
 0x55a   : > { %2696 = vmatpush3.msra.mxu1 %v2397_v41 }
 0x55b   : > { %2697 = vmatprep.subr.mxu1 %v2778_v4 }
 0x55c   : > { %2698 = vmatpush3.msra.mxu1 %v2396_v42 }
 0x5e1   : > { %v1611_v44 = vpop.f32.mrf.mxu1 }
 0x5e3   : > { %v2600_v46 = vpop.f32.mrf.mxu1 }
 0x5fb   : > { %v1687_v47 = vpop.f32.mrf.mxu1 }
 0x5fc   : > { %v1688_v48 = vadd.f32 %v1687_v47, %v1611_v44 }
 0x5fd   : > { %v2629_v49 = vpop.f32.mrf.mxu1 }
 0x5ff   : > { %v1762_v50 = vpop.f32.mrf.mxu1 }
 0x600   : > { %2664 = vmatmul.mubr.msk.f32.vlgmr.msra.gmra.mxu0 %vm1537_vm8, %v1762_v50 }
 0x601   : > { %2703 = vmatpush3.msk.msra.mxu0 %vm1170_vm3, %v3404_v43  ;;  %v2636_v51 = vpop.f32.mrf.mxu1  ;;  %2706 = vmatprep.mubr.msk.f32.mxu0 %vm2779_vm5, %v2778_v4  ;;  %v2425_v43 = vld [vmem:[%s3753_s6 + $0x1f8] sm:$0xff] }
 0x602   : > { %2704 = vmatprep.subr.mxu0 %v2778_v4 }
 0x603   : > { %2705 = vmatpush3.msra.mxu0 %v3406_v45  ;;  %v1928_v53 = vpop.f32.mrf.mxu1  ;;  %v2424_v45 = vld [vmem:[%s3753_s6 + $0x1f0] sm:$0xff] }
 0x604   : > { %2700 = vmatmul.mubr.msk.f32.vlgmr.msra.gmra.mxu1 %vm1537_vm8, %v1928_v53  ;;  %2707 = vmatmul.mubr.msk.f32.vlgmr.msra.gmra.mxu0 %vm1358_vm6, %v2411_v52 }
 0x605   : > { %2709 = vmatprep.subr.mxu0 %v2778_v4  ;;  %v2672_v55 = vpop.f32.mrf.mxu1  ;;  %2735 = vmatprep.mubr.msk.f32.mxu0 %vm2779_vm5, %v2778_v4 }
 0x606   : > { %2710 = vmatpush3.msk.msra.mxu0 %vm1541_vm7, %v2426_v54 }
 0x607   : > { %2711 = vmatprep.subr.mxu0 %v2778_v4 }
 0x608   : > { %2712 = vmatpush3.msra.mxu0 %v2425_v43 }
 0x609   : > { %2713 = vmatprep.subr.mxu0 %v2778_v4 }
 0x60a   : > { %2714 = vmatpush3.msra.mxu0 %v2424_v45 }
 0x60b   : > { %2715 = vmatprep.subr.mxu0 %v2778_v4 }
 0x60c   : > { %2716 = vmatpush3.msra.mxu0 %v2423_v56 }
 0x60d   : > { %2717 = vmatprep.subr.mxu0 %v2778_v4 }
 0x60e   : > { %2718 = vmatpush3.msra.mxu0 %v2422_v57 }
 0x60f   : > { %2719 = vmatprep.subr.mxu0 %v2778_v4 }
 0x610   : > { %2720 = vmatpush3.msra.mxu0 %v2421_v58 }
 0x611   : > { %2721 = vmatprep.subr.mxu0 %v2778_v4 }
 0x612   : > { %2722 = vmatpush3.msra.mxu0 %v2420_v59 }
 0x613   : > { %2723 = vmatprep.subr.mxu0 %v2778_v4 }
 0x614   : > { %2724 = vmatpush3.msra.mxu0 %v2419_v60 }
 0x615   : > { %2725 = vmatprep.subr.mxu0 %v2778_v4 }
 0x616   : > { %2726 = vmatpush3.msra.mxu0 %v2418_v61 }
 0x617   : > { %2727 = vmatprep.subr.mxu0 %v2778_v4 }
 0x618   : > { %2728 = vmatpush3.msra.mxu0 %v2417_v62 }
 0x619   : > { %2729 = vmatprep.subr.mxu0 %v2778_v4 }
 0x61a   : > { %2730 = vmatpush3.msra.mxu0 %v2416_v63 }
 0x61b   : > { %2731 = vmatprep.subr.mxu0 %v2778_v4 }
 0x61c   : > { %2732 = vmatpush3.msra.mxu0 %v2415_v0 }
 0x61d   : > { %2733 = vmatprep.subr.mxu0 %v2778_v4  ;;  %v2429_v4 = vld [vmem:[%s3757_s10] ss:$0 sm:$0xff] }
 0x61e   : > { %2734 = vmatpush3.msra.mxu0 %v2414_v1 }
 0x6c0   : > { %v1852_v2 = vpop.f32.mrf.mxu0 }
 0x6c1   : > { %v1856_v3 = vadd.f32 %v1852_v2, %v1688_v48 }
 0x6c2   : > { %v2665_v5 = vpop.f32.mrf.mxu0 }
 0x6c4   : > { %v2018_v6 = vpop.f32.mrf.mxu1  ;;  %v2094_v7 = vpop.f32.mrf.mxu0 }
 0x6c5   : > { %v2022_v8 = vadd.f32 %v2018_v6, %v1856_v3  ;;  %2736 = vmatmul.mubr.msk.f32.vlgmr.msra.gmra.mxu0 %vm1537_vm8, %v2094_v7 }
 0x6c6   : > { %v2708_v9 = vpop.f32.mrf.mxu0  ;;  %v2701_v10 = vpop.f32.mrf.mxu1 }
 0x785   : > { %v2184_v11 = vpop.f32.mrf.mxu0 }
 0x786   : > { %v2188_v12 = vadd.f32 %v2184_v11, %v2022_v8 }
 0x787   : > { %v2737_v13 = vpop.f32.mrf.mxu0 }
 0x788   : > { %v2196_v14 = vadd.f32 %v2429_v4, %v2188_v12 }
 0x78a   : > { %v2197_v15 = vmul.f32 0.5, %v2196_v14 }
 0x78c   : > { %2768 = vtanh.f32 %v2197_v15 }
 0x799   : > { %v2769_v16 = vpop.eup %2768 }
 0x79a   : > { %v2199_v17 = vmul.f32 0.5, %v2769_v16 }
 0x79c   : > { %v2200_v18 = vadd.f32 0.5, %v2199_v17 }
 0x79e   : > { %2202 = vst.msk [vmem:[%s384_s12] sm:$0x7f] %vm2201_vm9, %v2200_v18 }
 0x79f PF: > { %s21_s17 = sadd.s32 1, %s2776_s17  }
 0x7a0   : > { %p18_p4 = scmp.ge.s32.totalorder %s21_s17, 4  }
 0x7a2   :  { %20 = sbr.rel (!%p18_p4) target bundleno = 1 (0x1), region = 107 }

</bundles_post_ra>
